<compile_context>
chip_gen: v7x
topology: tpu7x:2x2x1
jax: 0.10.0
libtpu: 0.0.40
codegen_flags: <defaults>
</compile_context>

<pallas_src>
import numpy as np

import jax
import jax.numpy as jnp
from jax.experimental import pallas as pl
from jax.experimental.pallas import tpu as pltpu


SLOPE = 0.2   # LeakyReLU negative slope
EPS = 1e-5    # BatchNorm eps (PyTorch default)


# ---------------------------------------------------------------------------
# Host-side, one-time preprocessing: fold each Conv2d into a dense matrix.
# ---------------------------------------------------------------------------

def _conv_to_layer_matrix(w, h_in, w_in, stride, pad):
    """Fold conv weight (OC, IC, KH, KW) into T such that

        out[n, (oh*OW + ow)*OC + oc] = (in_flat[n, :] @ T)[(oh*OW + ow)*OC + oc]

    where in_flat[n, (ih*W + iw)*IC + ic] is the NHWC-flattened input.  Zero
    padding is encoded by leaving the corresponding entries of T at zero.
    """
    w = np.asarray(jax.device_get(w), np.float32)
    oc_n, ic_n, kh_n, kw_n = w.shape
    oh_n = (h_in + 2 * pad - kh_n) // stride + 1
    ow_n = (w_in + 2 * pad - kw_n) // stride + 1
    t = np.zeros((h_in * w_in * ic_n, oh_n * ow_n * oc_n), np.float32)
    for oh in range(oh_n):
        for ow in range(ow_n):
            col = (oh * ow_n + ow) * oc_n
            for kh in range(kh_n):
                ih = oh * stride + kh - pad
                if ih < 0 or ih >= h_in:
                    continue
                for kw in range(kw_n):
                    iw = ow * stride + kw - pad
                    if iw < 0 or iw >= w_in:
                        continue
                    row = (ih * w_in + iw) * ic_n
                    t[row:row + ic_n, col:col + oc_n] = w[:, :, kh, kw].T
    return t, oh_n, ow_n


def build_layer_mats(layers, isize, nc):
    """Returns (specs, device_mats).

    specs: static metadata (kind, oh, ow, oc) per layer, drives kernel codegen.
    device_mats: flat list of arrays fed to the kernel, per layer:
        T (bf16)  [+ G (f32), G^T (f32) for BatchNorm layers]
    where G is the 0/1 (cols -> channel) grouping matrix used for BN stats.
    """
    h, wdt = isize, isize
    specs, mats = [], []
    for kind, w, stride, pad in layers:
        t, oh, ow = _conv_to_layer_matrix(w, h, wdt, stride, pad)
        oc = w.shape[0]
        specs.append((kind, oh, ow, oc))
        mats.append(jnp.asarray(t, jnp.bfloat16))
        if kind == "conv_bn_lrelu":
            g = np.tile(np.eye(oc, dtype=np.float32), (oh * ow, 1))
            mats.append(jnp.asarray(g, jnp.float32))      # (oh*ow*oc, oc)
            mats.append(jnp.asarray(g.T, jnp.float32))    # (oc, oh*ow*oc)
        h, wdt = oh, ow
    return specs, mats


# ---------------------------------------------------------------------------
# The single fused Pallas kernel
# ---------------------------------------------------------------------------

def make_fused_kernel(specs, batch):
    inv_batch = 1.0 / float(batch)

    def kernel(*refs):
        o_ref = refs[-1]
        act = refs[0][...]                          # (N, H*W*C) bf16
        idx = 1
        for kind, oh, ow, oc in specs:
            t_ref = refs[idx]
            idx += 1
            # conv as a lane-dense bf16 matmul, f32 accumulation on the MXU
            h = jnp.dot(act, t_ref[...],
                        preferred_element_type=jnp.float32)   # (N, oh*ow*oc)
            if kind == "conv_lrelu":
                h = jnp.where(h >= 0.0, h, SLOPE * h)
                act = h.astype(jnp.bfloat16)
            elif kind == "conv_bn_lrelu":
                g_ref, gt_ref = refs[idx], refs[idx + 1]
                idx += 2
                inv_cnt = 1.0 / float(batch * oh * ow)
                # Full-batch BatchNorm statistics (training mode, biased var)
                # via a small 0/1 grouping matmul — stays inside this kernel.
                col_sum = jnp.sum(h, axis=0, keepdims=True)        # (1, cols)
                col_sq = jnp.sum(h * h, axis=0, keepdims=True)     # (1, cols)
                ch_mean = jnp.dot(col_sum, g_ref[...],
                                  preferred_element_type=jnp.float32) * inv_cnt
                ch_msq = jnp.dot(col_sq, g_ref[...],
                                 preferred_element_type=jnp.float32) * inv_cnt
                ch_scale = jax.lax.rsqrt(ch_msq - ch_mean * ch_mean + EPS)
                mean_cols = jnp.dot(ch_mean, gt_ref[...],
                                    preferred_element_type=jnp.float32)
                scale_cols = jnp.dot(ch_scale, gt_ref[...],
                                     preferred_element_type=jnp.float32)
                y = (h - mean_cols) * scale_cols
                y = jnp.where(y >= 0.0, y, SLOPE * y)
                act = y.astype(jnp.bfloat16)
            else:  # "final": 4x4 -> 1x1 conv, then mean over the batch
                o_ref[...] = jnp.sum(h, axis=0, keepdims=True) * inv_batch

    return kernel


def make_dcgan_d_forward(layers, isize, nc):
    specs, mats = build_layer_mats(layers, isize, nc)

    def forward(x):
        n = x.shape[0]
        # Single entry-point layout change: NCHW -> NHWC, flatten per sample.
        x_flat = (jnp.transpose(x, (0, 2, 3, 1))
                  .reshape(n, -1).astype(jnp.bfloat16))
        inputs = [x_flat] + list(mats)
        out = pl.pallas_call(
            make_fused_kernel(specs, n),
            out_shape=jax.ShapeDtypeStruct((1, 1), jnp.float32),
            in_specs=[pl.BlockSpec(memory_space=pltpu.MemorySpace.VMEM)
                      for _ in inputs],
            out_specs=pl.BlockSpec(memory_space=pltpu.MemorySpace.VMEM),
        )(*inputs)
        return out.reshape(1)      # == output.mean(0).view(1)

    return forward


# ---------------------------------------------------------------------------
# Parameter construction (deterministic, mirrors DCGAN_D.__init__)
# ---------------------------------------------------------------------------

def init_params(key, isize, nc, ndf, n_extra_layers=0):
    assert isize % 16 == 0, "isize has to be a multiple of 16"
    layers = []

    def _w(k, shape):
        return 0.05 * jax.random.normal(k, shape, jnp.float32)

    key, k = jax.random.split(key)
    layers.append(("conv_lrelu", _w(k, (ndf, nc, 4, 4)), 2, 1))
    csize, cndf = isize // 2, ndf

    for _ in range(n_extra_layers):
        key, k = jax.random.split(key)
        layers.append(("conv_bn_lrelu", _w(k, (cndf, cndf, 3, 3)), 1, 1))

    while csize > 4:
        key, k = jax.random.split(key)
        layers.append(("conv_bn_lrelu", _w(k, (2 * cndf, cndf, 4, 4)), 2, 1))
        cndf *= 2
        csize //= 2

    key, k = jax.random.split(key)
    layers.append(("final", _w(k, (1, cndf, 4, 4)), 1, 0))
    return layers


# ---------------------------------------------------------------------------
# Pure-JAX f32 reference (mirrors the PyTorch module) for a sanity check
# ---------------------------------------------------------------------------

def reference_forward(x, layers):
    out = x
    for kind, w, stride, pad in layers:
        out = jax.lax.conv_general_dilated(
            out, w, window_strides=(stride, stride),
            padding=[(pad, pad), (pad, pad)],
            dimension_numbers=("NCHW", "OIHW", "NCHW"))
        if kind == "conv_lrelu":
            out = jnp.where(out >= 0.0, out, SLOPE * out)
        elif kind == "conv_bn_lrelu":
            mean = jnp.mean(out, axis=(0, 2, 3), keepdims=True)
            var = jnp.mean(jnp.square(out - mean), axis=(0, 2, 3),
                           keepdims=True)
            out = (out - mean) * jax.lax.rsqrt(var + EPS)
            out = jnp.where(out >= 0.0, out, SLOPE * out)
    return jnp.mean(out, axis=0).reshape(1)


# ---------------------------------------------------------------------------

if __name__ == "__main__":
    # TODO(synk): ngpu / nn.parallel.data_parallel branch is a device-placement
    # detail (numerics no-op) and is intentionally not reproduced.
    N, NC, ISIZE, NDF = 2, 4, 16, 8

    key = jax.random.PRNGKey(0)
    kx, kp = jax.random.split(key)
    x = jax.random.normal(kx, (N, NC, ISIZE, ISIZE), jnp.float32)
    layers = init_params(kp, ISIZE, NC, NDF, n_extra_layers=0)

    fwd = jax.jit(make_dcgan_d_forward(layers, ISIZE, NC))
    out = jax.block_until_ready(fwd(x))
    assert out.shape == (1,) and out.dtype == jnp.float32

    ref = reference_forward(x, layers)
    np.testing.assert_allclose(np.asarray(out), np.asarray(ref),
                               rtol=5e-2, atol=5e-2)
    print("KERNEL_OK")
</pallas_src>

<mosaic_0001>
module attributes {stable_mosaic.version = 11 : i64} {
  func.func @kernel(%arg0: memref<2x1024xbf16, #tpu.memory_space<vmem>>, %arg1: memref<1024x512xbf16, #tpu.memory_space<vmem>>, %arg2: memref<512x256xbf16, #tpu.memory_space<vmem>>, %arg3: memref<256x16xf32, #tpu.memory_space<vmem>>, %arg4: memref<16x256xf32, #tpu.memory_space<vmem>>, %arg5: memref<256x1xbf16, #tpu.memory_space<vmem>>, %arg6: memref<1x1xf32, #tpu.memory_space<vmem>>) attributes {dimension_semantics = [], scalar_prefetch = 0 : i64, scratch_operands = 0 : i64, tpu.core_type = #tpu.core_type<tc>} {
    %c0 = arith.constant 0 : index
    %c0_0 = arith.constant 0 : index
    %0 = vector.load %arg0[%c0, %c0_0] : memref<2x1024xbf16, #tpu.memory_space<vmem>>, vector<2x1024xbf16>
    %c0_1 = arith.constant 0 : index
    %c0_2 = arith.constant 0 : index
    %1 = vector.load %arg1[%c0_1, %c0_2] : memref<1024x512xbf16, #tpu.memory_space<vmem>>, vector<1024x512xbf16>
    %cst = arith.constant dense<0.000000e+00> : vector<2x512xf32>
    %2 = tpu.matmul %0, %1, %cst {dimension_numbers = #tpu.dot_dimension_numbers<[1], [0], [0], [1], [0, 0, 1, 1], [], []>} : vector<2x1024xbf16>, vector<1024x512xbf16>, vector<2x512xf32> -> vector<2x512xf32>
    %cst_3 = arith.constant 0.000000e+00 : f32
    %3 = vector.broadcast %cst_3 : f32 to vector<2x512xf32>
    %4 = arith.cmpf oge, %2, %3 : vector<2x512xf32>
    %cst_4 = arith.constant 2.000000e-01 : f32
    %5 = vector.broadcast %cst_4 : f32 to vector<2x512xf32>
    %6 = arith.mulf %5, %2 : vector<2x512xf32>
    %7 = arith.select %4, %2, %6 : vector<2x512xi1>, vector<2x512xf32>
    %8 = arith.truncf %7 : vector<2x512xf32> to vector<2x512xbf16>
    %c0_5 = arith.constant 0 : index
    %c0_6 = arith.constant 0 : index
    %9 = vector.load %arg2[%c0_5, %c0_6] : memref<512x256xbf16, #tpu.memory_space<vmem>>, vector<512x256xbf16>
    %cst_7 = arith.constant dense<0.000000e+00> : vector<2x256xf32>
    %10 = tpu.matmul %8, %9, %cst_7 {dimension_numbers = #tpu.dot_dimension_numbers<[1], [0], [0], [1], [0, 0, 1, 1], [], []>} : vector<2x512xbf16>, vector<512x256xbf16>, vector<2x256xf32> -> vector<2x256xf32>
    %cst_8 = arith.constant dense<0.000000e+00> : vector<256xf32>
    %11 = vector.multi_reduction <add>, %10, %cst_8 [0] : vector<2x256xf32> to vector<256xf32>
    %12 = vector.shape_cast %11 : vector<256xf32> to vector<1x256xf32>
    %13 = arith.mulf %10, %10 : vector<2x256xf32>
    %cst_9 = arith.constant dense<0.000000e+00> : vector<256xf32>
    %14 = vector.multi_reduction <add>, %13, %cst_9 [0] : vector<2x256xf32> to vector<256xf32>
    %15 = vector.shape_cast %14 : vector<256xf32> to vector<1x256xf32>
    %c0_10 = arith.constant 0 : index
    %c0_11 = arith.constant 0 : index
    %16 = vector.load %arg3[%c0_10, %c0_11] : memref<256x16xf32, #tpu.memory_space<vmem>>, vector<256x16xf32>
    %cst_12 = arith.constant dense<0.000000e+00> : vector<1x16xf32>
    %17 = tpu.matmul %12, %16, %cst_12 {dimension_numbers = #tpu.dot_dimension_numbers<[1], [0], [0], [1], [0, 0, 1, 1], [], []>} : vector<1x256xf32>, vector<256x16xf32>, vector<1x16xf32> -> vector<1x16xf32>
    %cst_13 = arith.constant 3.125000e-02 : f32
    %18 = vector.broadcast %cst_13 : f32 to vector<1x16xf32>
    %19 = arith.mulf %17, %18 : vector<1x16xf32>
    %c0_14 = arith.constant 0 : index
    %c0_15 = arith.constant 0 : index
    %20 = vector.load %arg3[%c0_14, %c0_15] : memref<256x16xf32, #tpu.memory_space<vmem>>, vector<256x16xf32>
    %cst_16 = arith.constant dense<0.000000e+00> : vector<1x16xf32>
    %21 = tpu.matmul %15, %20, %cst_16 {dimension_numbers = #tpu.dot_dimension_numbers<[1], [0], [0], [1], [0, 0, 1, 1], [], []>} : vector<1x256xf32>, vector<256x16xf32>, vector<1x16xf32> -> vector<1x16xf32>
    %cst_17 = arith.constant 3.125000e-02 : f32
    %22 = vector.broadcast %cst_17 : f32 to vector<1x16xf32>
    %23 = arith.mulf %21, %22 : vector<1x16xf32>
    %24 = arith.mulf %19, %19 : vector<1x16xf32>
    %25 = arith.subf %23, %24 : vector<1x16xf32>
    %cst_18 = arith.constant 9.99999974E-6 : f32
    %26 = vector.broadcast %cst_18 : f32 to vector<1x16xf32>
    %27 = arith.addf %25, %26 : vector<1x16xf32>
    %28 = math.rsqrt %27 : vector<1x16xf32>
    %c0_19 = arith.constant 0 : index
    %c0_20 = arith.constant 0 : index
    %29 = vector.load %arg4[%c0_19, %c0_20] : memref<16x256xf32, #tpu.memory_space<vmem>>, vector<16x256xf32>
    %cst_21 = arith.constant dense<0.000000e+00> : vector<1x256xf32>
    %30 = tpu.matmul %19, %29, %cst_21 {dimension_numbers = #tpu.dot_dimension_numbers<[1], [0], [0], [1], [0, 0, 1, 1], [], []>} : vector<1x16xf32>, vector<16x256xf32>, vector<1x256xf32> -> vector<1x256xf32>
    %c0_22 = arith.constant 0 : index
    %c0_23 = arith.constant 0 : index
    %31 = vector.load %arg4[%c0_22, %c0_23] : memref<16x256xf32, #tpu.memory_space<vmem>>, vector<16x256xf32>
    %cst_24 = arith.constant dense<0.000000e+00> : vector<1x256xf32>
    %32 = tpu.matmul %28, %31, %cst_24 {dimension_numbers = #tpu.dot_dimension_numbers<[1], [0], [0], [1], [0, 0, 1, 1], [], []>} : vector<1x16xf32>, vector<16x256xf32>, vector<1x256xf32> -> vector<1x256xf32>
    %33 = vector.broadcast %30 : vector<1x256xf32> to vector<2x256xf32>
    %34 = arith.subf %10, %33 : vector<2x256xf32>
    %35 = vector.broadcast %32 : vector<1x256xf32> to vector<2x256xf32>
    %36 = arith.mulf %34, %35 : vector<2x256xf32>
    %cst_25 = arith.constant 0.000000e+00 : f32
    %37 = vector.broadcast %cst_25 : f32 to vector<2x256xf32>
    %38 = arith.cmpf oge, %36, %37 : vector<2x256xf32>
    %cst_26 = arith.constant 2.000000e-01 : f32
    %39 = vector.broadcast %cst_26 : f32 to vector<2x256xf32>
    %40 = arith.mulf %39, %36 : vector<2x256xf32>
    %41 = arith.select %38, %36, %40 : vector<2x256xi1>, vector<2x256xf32>
    %42 = arith.truncf %41 : vector<2x256xf32> to vector<2x256xbf16>
    %c0_27 = arith.constant 0 : index
    %c0_28 = arith.constant 0 : index
    %43 = vector.load %arg5[%c0_27, %c0_28] : memref<256x1xbf16, #tpu.memory_space<vmem>>, vector<256x1xbf16>
    %cst_29 = arith.constant dense<0.000000e+00> : vector<2x1xf32>
    %44 = tpu.matmul %42, %43, %cst_29 {dimension_numbers = #tpu.dot_dimension_numbers<[1], [0], [0], [1], [0, 0, 1, 1], [], []>} : vector<2x256xbf16>, vector<256x1xbf16>, vector<2x1xf32> -> vector<2x1xf32>
    %cst_30 = arith.constant dense<0.000000e+00> : vector<1xf32>
    %45 = vector.multi_reduction <add>, %44, %cst_30 [0] : vector<2x1xf32> to vector<1xf32>
    %46 = vector.shape_cast %45 : vector<1xf32> to vector<1x1xf32>
    %cst_31 = arith.constant 5.000000e-01 : f32
    %47 = vector.broadcast %cst_31 : f32 to vector<1x1xf32>
    %48 = arith.mulf %46, %47 : vector<1x1xf32>
    %c0_32 = arith.constant 0 : index
    %c0_33 = arith.constant 0 : index
    %49 = vector.load %arg6[%c0_32, %c0_33] : memref<1x1xf32, #tpu.memory_space<vmem>>, vector<1x1xf32>
    tpu.vector_store %arg6[%c0_32, %c0_33], %48 {strides = array<i32>} : memref<1x1xf32, #tpu.memory_space<vmem>>, vector<1x1xf32>,
    return
  }
}

</mosaic_0001>

<bundles_post_ra>
// kernel: forward.1
= control target key start
LH: loop header
LB: loop body
LE: loop exit
PB: predicated region body
PF: predicated region fallthrough
CT: control target
= control target key end

     0   :  { %v4069_v36 = vmov 1966171168   ;;  %v287_v38 = vlaneseq  ;;  %s5337_s0 = inlined_call_operand.vmem [shape: bf16[2,1024], index: 0, kind: input, shape index: {}]   ;;  %s5338_s1 = inlined_call_operand.vmem [shape: bf16[1024,512], index: 1, kind: input, shape index: {}]   ;;  %s5339_s2 = inlined_call_operand.vmem [shape: bf16[512,256], index: 2, kind: input, shape index: {}]   ;;  %s5340_s3 = inlined_call_operand.vmem [shape: f32[256,16], index: 3, kind: input, shape index: {}]   ;;  %s5341_s4 = inlined_call_operand.vmem [shape: f32[16,256], index: 4, kind: input, shape index: {}]   ;;  %s5342_s5 = inlined_call_operand.vmem [shape: bf16[256,1], index: 5, kind: input, shape index: {}]   ;;  %s5343_s6 = inlined_call_operand.hbm [shape: f32[1,1], index: 6, kind: output, shape index: {}]  }
   0x1   :  { %v3546_v0 = vld [vmem:[%s5338_s1 + $0x4] ss:$16 sps:$4 sm:$0xff]   ;;  %v3548_v1 = vld [vmem:[%s5338_s1 + $0xc] ss:$16 sps:$4 sm:$0xff]   ;;  %v3550_v2 = vld [vmem:[%s5338_s1] ss:$16 sps:$4 sm:$0xff]   ;;  %v285_v37 = vunpack.c.l.s4 %v4069_v36 }
   0x2   :  { %1620 = vmatprep.subr.bf16.mxu0 %v3546_v0  ;;  %v3551_v3 = vld [vmem:[%s5338_s1 + $0x8] ss:$16 sps:$4 sm:$0xff]   ;;  %1784 = vmatprep.subr.bf16.mxu1 %v3548_v1  ;;  %v3552_v4 = vld [vmem:[%s5338_s1 + $0x24] ss:$16 sps:$4 sm:$0xff]   ;;  %v3554_v5 = vld [vmem:[%s5338_s1 + $0x2c] ss:$16 sps:$4 sm:$0xff]  }
   0x3   :  { %1621 = vmatpush1.bf16.msra.mxu0 %v3550_v2  ;;  %1785 = vmatpush1.bf16.msra.mxu1 %v3551_v3  ;;  %v3556_v6 = vld [vmem:[%s5338_s1 + $0x20] ss:$16 sps:$4 sm:$0xff]   ;;  %v3557_v7 = vld [vmem:[%s5338_s1 + $0x28] ss:$16 sps:$4 sm:$0xff]   ;;  %v3558_v8 = vld [vmem:[%s5338_s1 + $0x44] ss:$16 sps:$4 sm:$0xff]   ;;  %v286_v42 = vunpack.c.0.s8 %v285_v37 }
   0x4   :  { %1622 = vmatprep.subr.bf16.mxu0 %v3552_v4  ;;  %1786 = vmatprep.subr.bf16.mxu1 %v3554_v5  ;;  %v3560_v9 = vld [vmem:[%s5338_s1 + $0x4c] ss:$16 sps:$4 sm:$0xff]   ;;  %v3562_v10 = vld [vmem:[%s5338_s1 + $0x40] ss:$16 sps:$4 sm:$0xff]   ;;  %v3563_v11 = vld [vmem:[%s5338_s1 + $0x48] ss:$16 sps:$4 sm:$0xff]  }
   0x5   :  { %v3564_v12 = vld [vmem:[%s5338_s1 + $0x64] ss:$16 sps:$4 sm:$0xff]   ;;  %v3566_v13 = vld [vmem:[%s5338_s1 + $0x6c] ss:$16 sps:$4 sm:$0xff]   ;;  %v3568_v14 = vld [vmem:[%s5338_s1 + $0x60] ss:$16 sps:$4 sm:$0xff]  }
   0x6   :  { %v3569_v15 = vld [vmem:[%s5338_s1 + $0x68] ss:$16 sps:$4 sm:$0xff]   ;;  %v3570_v16 = vld [vmem:[%s5338_s1 + $0x84] ss:$16 sps:$4 sm:$0xff]   ;;  %v3572_v17 = vld [vmem:[%s5338_s1 + $0x8c] ss:$16 sps:$4 sm:$0xff]  }
   0x7   :  { %1623 = vmatpush1.bf16.msra.mxu0 %v3556_v6  ;;  %1787 = vmatpush1.bf16.msra.mxu1 %v3557_v7  ;;  %v3574_v18 = vld [vmem:[%s5338_s1 + $0x80] ss:$16 sps:$4 sm:$0xff]   ;;  %v3575_v19 = vld [vmem:[%s5338_s1 + $0x88] ss:$16 sps:$4 sm:$0xff]   ;;  %v3576_v20 = vld [vmem:[%s5338_s1 + $0xa4] ss:$16 sps:$4 sm:$0xff]  }
   0x8   :  { %1624 = vmatprep.subr.bf16.mxu0 %v3558_v8  ;;  %1788 = vmatprep.subr.bf16.mxu1 %v3560_v9  ;;  %v3578_v21 = vld [vmem:[%s5338_s1 + $0xac] ss:$16 sps:$4 sm:$0xff]   ;;  %v3580_v22 = vld [vmem:[%s5338_s1 + $0xa0] ss:$16 sps:$4 sm:$0xff]   ;;  %v3581_v23 = vld [vmem:[%s5338_s1 + $0xa8] ss:$16 sps:$4 sm:$0xff]  }
   0x9   :  { %v3582_v24 = vld [vmem:[%s5338_s1 + $0xc4] ss:$16 sps:$4 sm:$0xff]   ;;  %v3584_v25 = vld [vmem:[%s5338_s1 + $0xcc] ss:$16 sps:$4 sm:$0xff]   ;;  %v3586_v26 = vld [vmem:[%s5338_s1 + $0xc0] ss:$16 sps:$4 sm:$0xff]  }
   0xa   :  { %v3587_v27 = vld [vmem:[%s5338_s1 + $0xc8] ss:$16 sps:$4 sm:$0xff]   ;;  %v3588_v28 = vld [vmem:[%s5338_s1 + $0xe4] ss:$16 sps:$4 sm:$0xff]   ;;  %v3590_v29 = vld [vmem:[%s5338_s1 + $0xec] ss:$16 sps:$4 sm:$0xff]  }
   0xb   :  { %1625 = vmatpush1.bf16.msra.mxu0 %v3562_v10  ;;  %1789 = vmatpush1.bf16.msra.mxu1 %v3563_v11  ;;  %v3592_v30 = vld [vmem:[%s5338_s1 + $0xe0] ss:$16 sps:$4 sm:$0xff]   ;;  %v3593_v31 = vld [vmem:[%s5338_s1 + $0xe8] ss:$16 sps:$4 sm:$0xff]   ;;  %v3594_v32 = vld [vmem:[%s5338_s1 + $0x104] ss:$16 sps:$4 sm:$0xff]  }
   0xc   :  { %1626 = vmatprep.subr.bf16.mxu0 %v3564_v12  ;;  %1790 = vmatprep.subr.bf16.mxu1 %v3566_v13  ;;  %v3596_v33 = vld [vmem:[%s5338_s1 + $0x10c] ss:$16 sps:$4 sm:$0xff]   ;;  %v3598_v34 = vld [vmem:[%s5338_s1 + $0x100] ss:$16 sps:$4 sm:$0xff]   ;;  %v3599_v35 = vld [vmem:[%s5338_s1 + $0x108] ss:$16 sps:$4 sm:$0xff]  }
   0xd   :  { %v3600_v39 = vld [vmem:[%s5338_s1 + $0x124] ss:$16 sps:$4 sm:$0xff]   ;;  %v3602_v40 = vld [vmem:[%s5338_s1 + $0x12c] ss:$16 sps:$4 sm:$0xff]   ;;  %v3604_v41 = vld [vmem:[%s5338_s1 + $0x120] ss:$16 sps:$4 sm:$0xff]  }
   0xe   :  { %v4224_v43 = vshrl.u32 %v287_v38, 7  ;;  %v3605_v44 = vld [vmem:[%s5338_s1 + $0x128] ss:$16 sps:$4 sm:$0xff]   ;;  %v3606_v45 = vld [vmem:[%s5338_s1 + $0x144] ss:$16 sps:$4 sm:$0xff]  }
   0xf   :  { %1627 = vmatpush1.bf16.msra.mxu0 %v3568_v14  ;;  %1791 = vmatpush1.bf16.msra.mxu1 %v3569_v15  ;;  %v3608_v46 = vld [vmem:[%s5338_s1 + $0x14c] ss:$16 sps:$4 sm:$0xff]   ;;  %v3610_v47 = vld [vmem:[%s5338_s1 + $0x140] ss:$16 sps:$4 sm:$0xff]   ;;  %v3611_v48 = vld [vmem:[%s5338_s1 + $0x148] ss:$16 sps:$4 sm:$0xff]  }
  0x10   :  { %1628 = vmatprep.subr.bf16.mxu0 %v3570_v16  ;;  %1792 = vmatprep.subr.bf16.mxu1 %v3572_v17  ;;  %v4242_v49 = vsub.s32 %v286_v42, %v4224_v43  ;;  %v3612_v50 = vld [vmem:[%s5338_s1 + $0x164] ss:$16 sps:$4 sm:$0xff]   ;;  %v3614_v51 = vld [vmem:[%s5338_s1 + $0x16c] ss:$16 sps:$4 sm:$0xff]   ;;  %v3616_v53 = vld [vmem:[%s5338_s1 + $0x160] ss:$16 sps:$4 sm:$0xff]  }
  0x11   :  { %v25_v52 = vld [vmem:[%s5337_s0] sm:$0xff]  ;;  %v3617_v55 = vld [vmem:[%s5338_s1 + $0x168] ss:$16 sps:$4 sm:$0xff]   ;;  %v3620_v57 = vld [vmem:[%s5338_s1 + $0x18c] ss:$16 sps:$4 sm:$0xff]  }
  0x12   :  { %v290_v54 = vrot.slane %v25_v52, %v4242_v49  ;;  %v3618_v56 = vld [vmem:[%s5338_s1 + $0x184] ss:$16 sps:$4 sm:$0xff]   ;;  %v3622_v59 = vld [vmem:[%s5338_s1 + $0x180] ss:$16 sps:$4 sm:$0xff]   ;;  %v3623_v61 = vld [vmem:[%s5338_s1 + $0x188] ss:$16 sps:$4 sm:$0xff]   ;;  %v283_v9 = vcombine.high %v25_v52, %v25_v52 }
  0x13   :  { %1629 = vmatpush1.bf16.msra.mxu0 %v3574_v18  ;;  %1793 = vmatpush1.bf16.msra.mxu1 %v3575_v19  ;;  %v3624_v62 = vld [vmem:[%s5338_s1 + $0x1a4] ss:$16 sps:$4 sm:$0xff]   ;;  %v3626_v63 = vld [vmem:[%s5338_s1 + $0x1ac] ss:$16 sps:$4 sm:$0xff]   ;;  %v3628_v0 = vld [vmem:[%s5338_s1 + $0x1a0] ss:$16 sps:$4 sm:$0xff]  }
  0x14   :  { %1630 = vmatprep.subr.bf16.mxu0 %v3576_v20  ;;  %1794 = vmatprep.subr.bf16.mxu1 %v3578_v21  ;;  %v298_v58 = vcombine.high %v290_v54, %v290_v54  ;;  %v3629_v1 = vld [vmem:[%s5338_s1 + $0x1a8] ss:$16 sps:$4 sm:$0xff]   ;;  %v3630_v2 = vld [vmem:[%s5338_s1 + $0x1c4] ss:$16 sps:$4 sm:$0xff]   ;;  %v3632_v3 = vld [vmem:[%s5338_s1 + $0x1cc] ss:$16 sps:$4 sm:$0xff]   ;;  %v297_v13 = vrot.slane %v283_v9, %v4242_v49  ;;  %v4320_v15 = vrot.slane %v290_v54, %v4242_v49 }
  0x15   :  { %v3634_v4 = vld [vmem:[%s5338_s1 + $0x1c0] ss:$16 sps:$4 sm:$0xff]   ;;  %v3635_v5 = vld [vmem:[%s5338_s1 + $0x1c8] ss:$16 sps:$4 sm:$0xff]   ;;  %v3636_v6 = vld [vmem:[%s5338_s1 + $0x1e4] ss:$16 sps:$4 sm:$0xff]  }
  0x16   :  { %v320_v60 = vrot.slane %v298_v58, %v4242_v49  ;;  %v3638_v7 = vld [vmem:[%s5338_s1 + $0x1ec] ss:$16 sps:$4 sm:$0xff]   ;;  %v3640_v8 = vld [vmem:[%s5338_s1 + $0x1e0] ss:$16 sps:$4 sm:$0xff]   ;;  %v3641_v10 = vld [vmem:[%s5338_s1 + $0x1e8] ss:$16 sps:$4 sm:$0xff]   ;;  %v299_v16 = vcombine.high %v297_v13, %v297_v13  ;;  %v4335_v21 = vrot.slane %v297_v13, %v4242_v49 }
  0x17   :  { %1631 = vmatpush1.bf16.msra.mxu0 %v3580_v22  ;;  %1795 = vmatpush1.bf16.msra.mxu1 %v3581_v23  ;;  %v3644_v11 = vld [vmem:[%s5338_s1 + $0x204] ss:$16 sps:$4 sm:$0xff]   ;;  %v3647_v12 = vld [vmem:[%s5338_s1 + $0x20c] ss:$16 sps:$4 sm:$0xff]   ;;  %v3642_v14 = vld [vmem:[%s5338_s1 + $0x200] ss:$16 sps:$4 sm:$0xff]  }
  0x18   :  { %1632 = vmatprep.subr.bf16.mxu0 %v3582_v24  ;;  %1796 = vmatprep.subr.bf16.mxu1 %v3584_v25  ;;  %v3645_v17 = vld [vmem:[%s5338_s1 + $0x208] ss:$16 sps:$4 sm:$0xff]   ;;  %v3650_v18 = vld [vmem:[%s5338_s1 + $0x224] ss:$16 sps:$4 sm:$0xff]   ;;  %v3653_v19 = vld [vmem:[%s5338_s1 + $0x22c] ss:$16 sps:$4 sm:$0xff]   ;;  %v4332_v20 = vrot.slane %v299_v16, %v4242_v49  ;;  %v330_v22 = vcombine.high %v320_v60, %v320_v60 }
  0x19   :  { %1652 = vmatprep.mubr.bf16.mxu0 %v320_v60  ;;  %1816 = vmatprep.mubr.bf16.mxu1 %v320_v60  ;;  %v3648_v23 = vld [vmem:[%s5338_s1 + $0x220] ss:$16 sps:$4 sm:$0xff]   ;;  %v3651_v24 = vld [vmem:[%s5338_s1 + $0x228] ss:$16 sps:$4 sm:$0xff]   ;;  %v3656_v25 = vld [vmem:[%s5338_s1 + $0x244] ss:$16 sps:$4 sm:$0xff]  }
  0x1a   :  { %v3669_v36 = vld [vmem:[%s5338_s1 + $0x288] ss:$16 sps:$4 sm:$0xff]   ;;  %v3674_v37 = vld [vmem:[%s5338_s1 + $0x2a4] ss:$16 sps:$4 sm:$0xff]   ;;  %v3677_v38 = vld [vmem:[%s5338_s1 + $0x2ac] ss:$16 sps:$4 sm:$0xff]  }
  0x1b   :  { %1633 = vmatpush1.bf16.msra.mxu0 %v3586_v26  ;;  %1797 = vmatpush1.bf16.msra.mxu1 %v3587_v27  ;;  %v3659_v26 = vld [vmem:[%s5338_s1 + $0x24c] ss:$16 sps:$4 sm:$0xff]   ;;  %v3654_v27 = vld [vmem:[%s5338_s1 + $0x240] ss:$16 sps:$4 sm:$0xff]   ;;  %v3687_v49 = vld [vmem:[%s5338_s1 + $0x2e8] ss:$16 sps:$4 sm:$0xff]  }
  0x1c   :  { %1634 = vmatprep.subr.bf16.mxu0 %v3588_v28  ;;  %1798 = vmatprep.subr.bf16.mxu1 %v3590_v29  ;;  %v3657_v28 = vld [vmem:[%s5338_s1 + $0x248] ss:$16 sps:$4 sm:$0xff]   ;;  %v3662_v29 = vld [vmem:[%s5338_s1 + $0x264] ss:$16 sps:$4 sm:$0xff]   ;;  %v3683_v42 = vld [vmem:[%s5338_s1 + $0x2cc] ss:$16 sps:$4 sm:$0xff]  }
  0x1d   :  { %v3690_v52 = vld [vmem:[%s5338_s1 + $0x300] ss:$16 sps:$4 sm:$0xff]   ;;  %v3698_v54 = vld [vmem:[%s5338_s1 + $0x324] ss:$16 sps:$4 sm:$0xff]   ;;  %v3723_v9 = vld [vmem:[%s5338_s1 + $0x3a8] ss:$16 sps:$4 sm:$0xff]  }
  0x1e   :  { %v3704_v58 = vld [vmem:[%s5338_s1 + $0x344] ss:$16 sps:$4 sm:$0xff]   ;;  %v3702_v60 = vld [vmem:[%s5338_s1 + $0x340] ss:$16 sps:$4 sm:$0xff]   ;;  %v3729_v13 = vld [vmem:[%s5338_s1 + $0x3c8] ss:$16 sps:$4 sm:$0xff]  }
  0x1f   :  { %1635 = vmatpush1.bf16.msra.mxu0 %v3592_v30  ;;  %1799 = vmatpush1.bf16.msra.mxu1 %v3593_v31  ;;  %v3665_v30 = vld [vmem:[%s5338_s1 + $0x26c] ss:$16 sps:$4 sm:$0xff]   ;;  %v3660_v31 = vld [vmem:[%s5338_s1 + $0x260] ss:$16 sps:$4 sm:$0xff]  }
  0x20   :  { %1636 = vmatprep.subr.bf16.mxu0 %v3594_v32  ;;  %1800 = vmatprep.subr.bf16.mxu1 %v3596_v33  ;;  %v3663_v32 = vld [vmem:[%s5338_s1 + $0x268] ss:$16 sps:$4 sm:$0xff]   ;;  %v3668_v33 = vld [vmem:[%s5338_s1 + $0x284] ss:$16 sps:$4 sm:$0xff]   ;;  %v3737_v16 = vld [vmem:[%s5338_s1 + $0x3ec] ss:$16 sps:$4 sm:$0xff]  }
  0x23   :  { %1637 = vmatpush1.bf16.msra.mxu0 %v3598_v34  ;;  %1801 = vmatpush1.bf16.msra.mxu1 %v3599_v35  ;;  %v3671_v34 = vld [vmem:[%s5338_s1 + $0x28c] ss:$16 sps:$4 sm:$0xff]   ;;  %v3666_v35 = vld [vmem:[%s5338_s1 + $0x280] ss:$16 sps:$4 sm:$0xff]  }
  0x24   :  { %1638 = vmatprep.subr.bf16.mxu0 %v3600_v39  ;;  %1802 = vmatprep.subr.bf16.mxu1 %v3602_v40  ;;  %v3672_v39 = vld [vmem:[%s5338_s1 + $0x2a0] ss:$16 sps:$4 sm:$0xff]   ;;  %v3675_v40 = vld [vmem:[%s5338_s1 + $0x2a8] ss:$16 sps:$4 sm:$0xff]  }
  0x27   :  { %1639 = vmatpush1.bf16.msra.mxu0 %v3604_v41  ;;  %1803 = vmatpush1.bf16.msra.mxu1 %v3605_v44  ;;  %v3680_v41 = vld [vmem:[%s5338_s1 + $0x2c4] ss:$16 sps:$4 sm:$0xff]   ;;  %v3678_v44 = vld [vmem:[%s5338_s1 + $0x2c0] ss:$16 sps:$4 sm:$0xff]  }
  0x28   :  { %1640 = vmatprep.subr.bf16.mxu0 %v3606_v45  ;;  %1804 = vmatprep.subr.bf16.mxu1 %v3608_v46  ;;  %v3681_v45 = vld [vmem:[%s5338_s1 + $0x2c8] ss:$16 sps:$4 sm:$0xff]   ;;  %v3686_v46 = vld [vmem:[%s5338_s1 + $0x2e4] ss:$16 sps:$4 sm:$0xff]  }
  0x2b   :  { %1641 = vmatpush1.bf16.msra.mxu0 %v3610_v47  ;;  %1805 = vmatpush1.bf16.msra.mxu1 %v3611_v48  ;;  %v3689_v47 = vld [vmem:[%s5338_s1 + $0x2ec] ss:$16 sps:$4 sm:$0xff]   ;;  %v3684_v48 = vld [vmem:[%s5338_s1 + $0x2e0] ss:$16 sps:$4 sm:$0xff]  }
  0x2c   :  { %1642 = vmatprep.subr.bf16.mxu0 %v3612_v50  ;;  %1806 = vmatprep.subr.bf16.mxu1 %v3614_v51  ;;  %v3692_v50 = vld [vmem:[%s5338_s1 + $0x304] ss:$16 sps:$4 sm:$0xff]   ;;  %v3695_v51 = vld [vmem:[%s5338_s1 + $0x30c] ss:$16 sps:$4 sm:$0xff]  }
  0x2f   :  { %1643 = vmatpush1.bf16.msra.mxu0 %v3616_v53  ;;  %1807 = vmatpush1.bf16.msra.mxu1 %v3617_v55  ;;  %v3693_v53 = vld [vmem:[%s5338_s1 + $0x308] ss:$16 sps:$4 sm:$0xff]   ;;  %v3701_v55 = vld [vmem:[%s5338_s1 + $0x32c] ss:$16 sps:$4 sm:$0xff]  }
  0x30   :  { %1644 = vmatprep.subr.bf16.mxu0 %v3618_v56  ;;  %1808 = vmatprep.subr.bf16.mxu1 %v3620_v57  ;;  %v3696_v56 = vld [vmem:[%s5338_s1 + $0x320] ss:$16 sps:$4 sm:$0xff]   ;;  %v3699_v57 = vld [vmem:[%s5338_s1 + $0x328] ss:$16 sps:$4 sm:$0xff]  }
  0x33   :  { %1645 = vmatpush1.bf16.msra.mxu0 %v3622_v59  ;;  %1809 = vmatpush1.bf16.msra.mxu1 %v3623_v61  ;;  %v3707_v59 = vld [vmem:[%s5338_s1 + $0x34c] ss:$16 sps:$4 sm:$0xff]   ;;  %v3705_v61 = vld [vmem:[%s5338_s1 + $0x348] ss:$16 sps:$4 sm:$0xff]  }
  0x34   :  { %1646 = vmatprep.subr.bf16.mxu0 %v3624_v62  ;;  %1810 = vmatprep.subr.bf16.mxu1 %v3626_v63  ;;  %v3710_v62 = vld [vmem:[%s5338_s1 + $0x364] ss:$16 sps:$4 sm:$0xff]   ;;  %v3713_v63 = vld [vmem:[%s5338_s1 + $0x36c] ss:$16 sps:$4 sm:$0xff]  }
  0x37   :  { %1647 = vmatpush1.bf16.msra.mxu0 %v3628_v0  ;;  %1811 = vmatpush1.bf16.msra.mxu1 %v3629_v1  ;;  %v3708_v0 = vld [vmem:[%s5338_s1 + $0x360] ss:$16 sps:$4 sm:$0xff]   ;;  %v3711_v1 = vld [vmem:[%s5338_s1 + $0x368] ss:$16 sps:$4 sm:$0xff]  }
  0x38   :  { %1648 = vmatprep.subr.bf16.mxu0 %v3630_v2  ;;  %1812 = vmatprep.subr.bf16.mxu1 %v3632_v3  ;;  %v3716_v2 = vld [vmem:[%s5338_s1 + $0x384] ss:$16 sps:$4 sm:$0xff]   ;;  %v3719_v3 = vld [vmem:[%s5338_s1 + $0x38c] ss:$16 sps:$4 sm:$0xff]  }
  0x3b   :  { %1649 = vmatpush1.bf16.msra.mxu0 %v3634_v4  ;;  %1813 = vmatpush1.bf16.msra.mxu1 %v3635_v5  ;;  %v3714_v4 = vld [vmem:[%s5338_s1 + $0x380] ss:$16 sps:$4 sm:$0xff]   ;;  %v3717_v5 = vld [vmem:[%s5338_s1 + $0x388] ss:$16 sps:$4 sm:$0xff]  }
  0x3c   :  { %1650 = vmatprep.subr.bf16.mxu0 %v3636_v6  ;;  %1814 = vmatprep.subr.bf16.mxu1 %v3638_v7  ;;  %v3722_v6 = vld [vmem:[%s5338_s1 + $0x3a4] ss:$16 sps:$4 sm:$0xff]   ;;  %v3725_v7 = vld [vmem:[%s5338_s1 + $0x3ac] ss:$16 sps:$4 sm:$0xff]  }
  0x3f   :  { %1651 = vmatpush1.bf16.msra.mxu0 %v3640_v8  ;;  %1815 = vmatpush1.bf16.msra.mxu1 %v3641_v10  ;;  %v3720_v8 = vld [vmem:[%s5338_s1 + $0x3a0] ss:$16 sps:$4 sm:$0xff]   ;;  %v3728_v10 = vld [vmem:[%s5338_s1 + $0x3c4] ss:$16 sps:$4 sm:$0xff]  }
  0x40   :  { %1661 = vmatprep.subr.bf16.mxu0 %v3644_v11  ;;  %1825 = vmatprep.subr.bf16.mxu1 %v3647_v12  ;;  %v3731_v11 = vld [vmem:[%s5338_s1 + $0x3cc] ss:$16 sps:$4 sm:$0xff]   ;;  %v3726_v12 = vld [vmem:[%s5338_s1 + $0x3c0] ss:$16 sps:$4 sm:$0xff]  }
  0x42   :  { %1653 = vmatmul.mubr.bf16.vlgmr.msra.gmra.mrb[0].mxu0 %v4320_v15  ;;  %1817 = vmatmul.mubr.bf16.vlgmr.msra.gmra.mrb[0].mxu1 %v4320_v15 }
  0x43   :  { %1662 = vmatpush1.bf16.msra.mxu0 %v3642_v14  ;;  %1826 = vmatpush1.bf16.msra.mxu1 %v3645_v17  ;;  %v3734_v14 = vld [vmem:[%s5338_s1 + $0x3e4] ss:$16 sps:$4 sm:$0xff]   ;;  %v3732_v17 = vld [vmem:[%s5338_s1 + $0x3e0] ss:$16 sps:$4 sm:$0xff]  }
  0x44   :  { %1663 = vmatprep.subr.bf16.mxu0 %v3650_v18  ;;  %1827 = vmatprep.subr.bf16.mxu1 %v3653_v19  ;;  %v3735_v18 = vld [vmem:[%s5338_s1 + $0x3e8] ss:$16 sps:$4 sm:$0xff]   ;;  %v3740_v19 = vld [vmem:[%s5338_s1 + $0x404] ss:$16 sps:$4 sm:$0xff]  }
  0x45   :  { %1693 = vmatprep.mubr.bf16.mxu0 %v330_v22  ;;  %1857 = vmatprep.mubr.bf16.mxu1 %v330_v22  ;;  %v3743_v22 = vld [vmem:[%s5338_s1 + $0x40c] ss:$16 sps:$4 sm:$0xff]  }
  0x47   :  { %1664 = vmatpush1.bf16.msra.mxu0 %v3648_v23  ;;  %1828 = vmatpush1.bf16.msra.mxu1 %v3651_v24  ;;  %v3738_v23 = vld [vmem:[%s5338_s1 + $0x400] ss:$16 sps:$4 sm:$0xff]   ;;  %v328_v24 = vcombine.high %v4320_v15, %v4320_v15 }
  0x48   :  { %1665 = vmatprep.subr.bf16.mxu0 %v3656_v25  ;;  %1829 = vmatprep.subr.bf16.mxu1 %v3659_v26  ;;  %v3741_v25 = vld [vmem:[%s5338_s1 + $0x408] ss:$16 sps:$4 sm:$0xff]   ;;  %v3746_v26 = vld [vmem:[%s5338_s1 + $0x424] ss:$16 sps:$4 sm:$0xff]   ;;  %v3744_v15 = vld [vmem:[%s5338_s1 + $0x420] ss:$16 sps:$4 sm:$0xff]  }
  0x4b   :  { %1666 = vmatpush1.bf16.msra.mxu0 %v3654_v27  ;;  %1830 = vmatpush1.bf16.msra.mxu1 %v3657_v28  ;;  %v3749_v27 = vld [vmem:[%s5338_s1 + $0x42c] ss:$16 sps:$4 sm:$0xff]   ;;  %v3747_v28 = vld [vmem:[%s5338_s1 + $0x428] ss:$16 sps:$4 sm:$0xff]  }
  0x4c   :  { %1667 = vmatprep.subr.bf16.mxu0 %v3662_v29  ;;  %1831 = vmatprep.subr.bf16.mxu1 %v3665_v30  ;;  %v3752_v29 = vld [vmem:[%s5338_s1 + $0x444] ss:$16 sps:$4 sm:$0xff]   ;;  %v3755_v30 = vld [vmem:[%s5338_s1 + $0x44c] ss:$16 sps:$4 sm:$0xff]  }
  0x4f   :  { %1668 = vmatpush1.bf16.msra.mxu0 %v3660_v31  ;;  %1832 = vmatpush1.bf16.msra.mxu1 %v3663_v32  ;;  %v3750_v31 = vld [vmem:[%s5338_s1 + $0x440] ss:$16 sps:$4 sm:$0xff]   ;;  %v3753_v32 = vld [vmem:[%s5338_s1 + $0x448] ss:$16 sps:$4 sm:$0xff]  }
  0x50   :  { %1669 = vmatprep.subr.bf16.mxu0 %v3668_v33  ;;  %1833 = vmatprep.subr.bf16.mxu1 %v3671_v34  ;;  %v3758_v33 = vld [vmem:[%s5338_s1 + $0x464] ss:$16 sps:$4 sm:$0xff]   ;;  %v3761_v34 = vld [vmem:[%s5338_s1 + $0x46c] ss:$16 sps:$4 sm:$0xff]  }
  0x53   :  { %1670 = vmatpush1.bf16.msra.mxu0 %v3666_v35  ;;  %1834 = vmatpush1.bf16.msra.mxu1 %v3669_v36  ;;  %v3756_v35 = vld [vmem:[%s5338_s1 + $0x460] ss:$16 sps:$4 sm:$0xff]   ;;  %v3759_v36 = vld [vmem:[%s5338_s1 + $0x468] ss:$16 sps:$4 sm:$0xff]  }
  0x54   :  { %1671 = vmatprep.subr.bf16.mxu0 %v3674_v37  ;;  %1835 = vmatprep.subr.bf16.mxu1 %v3677_v38  ;;  %v3764_v37 = vld [vmem:[%s5338_s1 + $0x484] ss:$16 sps:$4 sm:$0xff]   ;;  %v3767_v38 = vld [vmem:[%s5338_s1 + $0x48c] ss:$16 sps:$4 sm:$0xff]  }
  0x57   :  { %1672 = vmatpush1.bf16.msra.mxu0 %v3672_v39  ;;  %1836 = vmatpush1.bf16.msra.mxu1 %v3675_v40  ;;  %v3762_v39 = vld [vmem:[%s5338_s1 + $0x480] ss:$16 sps:$4 sm:$0xff]   ;;  %v3765_v40 = vld [vmem:[%s5338_s1 + $0x488] ss:$16 sps:$4 sm:$0xff]  }
  0x58   :  { %1673 = vmatprep.subr.bf16.mxu0 %v3680_v41  ;;  %1837 = vmatprep.subr.bf16.mxu1 %v3683_v42  ;;  %v3770_v41 = vld [vmem:[%s5338_s1 + $0x4a4] ss:$16 sps:$4 sm:$0xff]   ;;  %v3773_v42 = vld [vmem:[%s5338_s1 + $0x4ac] ss:$16 sps:$4 sm:$0xff]  }
  0x5b   :  { %1674 = vmatpush1.bf16.msra.mxu0 %v3678_v44  ;;  %1838 = vmatpush1.bf16.msra.mxu1 %v3681_v45  ;;  %v3768_v44 = vld [vmem:[%s5338_s1 + $0x4a0] ss:$16 sps:$4 sm:$0xff]   ;;  %v3771_v45 = vld [vmem:[%s5338_s1 + $0x4a8] ss:$16 sps:$4 sm:$0xff]  }
  0x5c   :  { %1675 = vmatprep.subr.bf16.mxu0 %v3686_v46  ;;  %1839 = vmatprep.subr.bf16.mxu1 %v3689_v47  ;;  %v3776_v46 = vld [vmem:[%s5338_s1 + $0x4c4] ss:$16 sps:$4 sm:$0xff]   ;;  %v3779_v47 = vld [vmem:[%s5338_s1 + $0x4cc] ss:$16 sps:$4 sm:$0xff]  }
  0x5f   :  { %1676 = vmatpush1.bf16.msra.mxu0 %v3684_v48  ;;  %1840 = vmatpush1.bf16.msra.mxu1 %v3687_v49  ;;  %v3774_v48 = vld [vmem:[%s5338_s1 + $0x4c0] ss:$16 sps:$4 sm:$0xff]   ;;  %v3777_v49 = vld [vmem:[%s5338_s1 + $0x4c8] ss:$16 sps:$4 sm:$0xff]  }
  0x60   :  { %1677 = vmatprep.subr.bf16.mxu0 %v3692_v50  ;;  %1841 = vmatprep.subr.bf16.mxu1 %v3695_v51  ;;  %v3782_v50 = vld [vmem:[%s5338_s1 + $0x4e4] ss:$16 sps:$4 sm:$0xff]   ;;  %v3785_v51 = vld [vmem:[%s5338_s1 + $0x4ec] ss:$16 sps:$4 sm:$0xff]  }
  0x63   :  { %1678 = vmatpush1.bf16.msra.mxu0 %v3690_v52  ;;  %1842 = vmatpush1.bf16.msra.mxu1 %v3693_v53  ;;  %v3780_v52 = vld [vmem:[%s5338_s1 + $0x4e0] ss:$16 sps:$4 sm:$0xff]   ;;  %v3783_v53 = vld [vmem:[%s5338_s1 + $0x4e8] ss:$16 sps:$4 sm:$0xff]  }
  0x64   :  { %1679 = vmatprep.subr.bf16.mxu0 %v3698_v54  ;;  %1843 = vmatprep.subr.bf16.mxu1 %v3701_v55  ;;  %v3788_v54 = vld [vmem:[%s5338_s1 + $0x504] ss:$16 sps:$4 sm:$0xff]   ;;  %v3791_v55 = vld [vmem:[%s5338_s1 + $0x50c] ss:$16 sps:$4 sm:$0xff]  }
  0x67   :  { %1680 = vmatpush1.bf16.msra.mxu0 %v3696_v56  ;;  %1844 = vmatpush1.bf16.msra.mxu1 %v3699_v57  ;;  %v3786_v56 = vld [vmem:[%s5338_s1 + $0x500] ss:$16 sps:$4 sm:$0xff]   ;;  %v3789_v57 = vld [vmem:[%s5338_s1 + $0x508] ss:$16 sps:$4 sm:$0xff]  }
  0x68   :  { %1681 = vmatprep.subr.bf16.mxu0 %v3704_v58  ;;  %1845 = vmatprep.subr.bf16.mxu1 %v3707_v59  ;;  %v3794_v58 = vld [vmem:[%s5338_s1 + $0x524] ss:$16 sps:$4 sm:$0xff]   ;;  %v3797_v59 = vld [vmem:[%s5338_s1 + $0x52c] ss:$16 sps:$4 sm:$0xff]  }
  0x6b   :  { %1682 = vmatpush1.bf16.msra.mxu0 %v3702_v60  ;;  %1846 = vmatpush1.bf16.msra.mxu1 %v3705_v61  ;;  %v3792_v60 = vld [vmem:[%s5338_s1 + $0x520] ss:$16 sps:$4 sm:$0xff]   ;;  %v3795_v61 = vld [vmem:[%s5338_s1 + $0x528] ss:$16 sps:$4 sm:$0xff]  }
  0x6c   :  { %1683 = vmatprep.subr.bf16.mxu0 %v3710_v62  ;;  %1847 = vmatprep.subr.bf16.mxu1 %v3713_v63  ;;  %v3800_v62 = vld [vmem:[%s5338_s1 + $0x544] ss:$16 sps:$4 sm:$0xff]   ;;  %v3803_v63 = vld [vmem:[%s5338_s1 + $0x54c] ss:$16 sps:$4 sm:$0xff]  }
  0x6f   :  { %1684 = vmatpush1.bf16.msra.mxu0 %v3708_v0  ;;  %1848 = vmatpush1.bf16.msra.mxu1 %v3711_v1  ;;  %v3798_v0 = vld [vmem:[%s5338_s1 + $0x540] ss:$16 sps:$4 sm:$0xff]   ;;  %v3801_v1 = vld [vmem:[%s5338_s1 + $0x548] ss:$16 sps:$4 sm:$0xff]  }
  0x70   :  { %1685 = vmatprep.subr.bf16.mxu0 %v3716_v2  ;;  %1849 = vmatprep.subr.bf16.mxu1 %v3719_v3  ;;  %v3806_v2 = vld [vmem:[%s5338_s1 + $0x564] ss:$16 sps:$4 sm:$0xff]   ;;  %v3809_v3 = vld [vmem:[%s5338_s1 + $0x56c] ss:$16 sps:$4 sm:$0xff]  }
  0x73   :  { %1686 = vmatpush1.bf16.msra.mxu0 %v3714_v4  ;;  %1850 = vmatpush1.bf16.msra.mxu1 %v3717_v5  ;;  %v3804_v4 = vld [vmem:[%s5338_s1 + $0x560] ss:$16 sps:$4 sm:$0xff]   ;;  %v3807_v5 = vld [vmem:[%s5338_s1 + $0x568] ss:$16 sps:$4 sm:$0xff]  }
  0x74   :  { %1687 = vmatprep.subr.bf16.mxu0 %v3722_v6  ;;  %1851 = vmatprep.subr.bf16.mxu1 %v3725_v7  ;;  %v3812_v6 = vld [vmem:[%s5338_s1 + $0x584] ss:$16 sps:$4 sm:$0xff]   ;;  %v3815_v7 = vld [vmem:[%s5338_s1 + $0x58c] ss:$16 sps:$4 sm:$0xff]  }
  0x77   :  { %1688 = vmatpush1.bf16.msra.mxu0 %v3720_v8  ;;  %1852 = vmatpush1.bf16.msra.mxu1 %v3723_v9  ;;  %v3810_v8 = vld [vmem:[%s5338_s1 + $0x580] ss:$16 sps:$4 sm:$0xff]   ;;  %v3813_v9 = vld [vmem:[%s5338_s1 + $0x588] ss:$16 sps:$4 sm:$0xff]  }
  0x78   :  { %1689 = vmatprep.subr.bf16.mxu0 %v3728_v10  ;;  %1853 = vmatprep.subr.bf16.mxu1 %v3731_v11  ;;  %v3818_v10 = vld [vmem:[%s5338_s1 + $0x5a4] ss:$16 sps:$4 sm:$0xff]   ;;  %v3821_v11 = vld [vmem:[%s5338_s1 + $0x5ac] ss:$16 sps:$4 sm:$0xff]  }
  0x7b   :  { %1690 = vmatpush1.bf16.msra.mxu0 %v3726_v12  ;;  %1854 = vmatpush1.bf16.msra.mxu1 %v3729_v13  ;;  %v3816_v12 = vld [vmem:[%s5338_s1 + $0x5a0] ss:$16 sps:$4 sm:$0xff]   ;;  %v3819_v13 = vld [vmem:[%s5338_s1 + $0x5a8] ss:$16 sps:$4 sm:$0xff]  }
  0x7c   :  { %1691 = vmatprep.subr.bf16.mxu0 %v3734_v14  ;;  %1855 = vmatprep.subr.bf16.mxu1 %v3737_v16  ;;  %v3824_v14 = vld [vmem:[%s5338_s1 + $0x5c4] ss:$16 sps:$4 sm:$0xff]   ;;  %v3827_v16 = vld [vmem:[%s5338_s1 + $0x5cc] ss:$16 sps:$4 sm:$0xff]  }
  0x7f   :  { %1692 = vmatpush1.bf16.msra.mxu0 %v3732_v17  ;;  %1856 = vmatpush1.bf16.msra.mxu1 %v3735_v18  ;;  %v3822_v17 = vld [vmem:[%s5338_s1 + $0x5c0] ss:$16 sps:$4 sm:$0xff]   ;;  %v3825_v18 = vld [vmem:[%s5338_s1 + $0x5c8] ss:$16 sps:$4 sm:$0xff]  }
  0x80   :  { %1702 = vmatprep.subr.bf16.mxu0 %v3740_v19  ;;  %1866 = vmatprep.subr.bf16.mxu1 %v3743_v22  ;;  %v3830_v19 = vld [vmem:[%s5338_s1 + $0x5e4] ss:$16 sps:$4 sm:$0xff]   ;;  %v3833_v22 = vld [vmem:[%s5338_s1 + $0x5ec] ss:$16 sps:$4 sm:$0xff]  }
  0x82   :  { %1694 = vmatmul.mubr.bf16.vlgmr.msra.gmra.mrb[0].mxu0 %v328_v24  ;;  %1858 = vmatmul.mubr.bf16.vlgmr.msra.gmra.mrb[0].mxu1 %v328_v24  ;;  %v3831_v24 = vld [vmem:[%s5338_s1 + $0x5e8] ss:$16 sps:$4 sm:$0xff]  }
  0x83   :  { %1703 = vmatpush1.bf16.msra.mxu0 %v3738_v23  ;;  %1867 = vmatpush1.bf16.msra.mxu1 %v3741_v25  ;;  %v3828_v23 = vld [vmem:[%s5338_s1 + $0x5e0] ss:$16 sps:$4 sm:$0xff]   ;;  %v3837_v25 = vld [vmem:[%s5338_s1 + $0x604] ss:$16 sps:$4 sm:$0xff]  }
  0x84   :  { %1704 = vmatprep.subr.bf16.mxu0 %v3746_v26  ;;  %1868 = vmatprep.subr.bf16.mxu1 %v3749_v27  ;;  %v3840_v26 = vld [vmem:[%s5338_s1 + $0x60c] ss:$16 sps:$4 sm:$0xff]   ;;  %v3835_v27 = vld [vmem:[%s5338_s1 + $0x600] ss:$16 sps:$4 sm:$0xff]  }
  0x85   :  { %1734 = vmatprep.mubr.bf16.mxu0 %v4332_v20  ;;  %1898 = vmatprep.mubr.bf16.mxu1 %v4332_v20 }
  0x87   :  { %1705 = vmatpush1.bf16.msra.mxu0 %v3744_v15  ;;  %1869 = vmatpush1.bf16.msra.mxu1 %v3747_v28  ;;  %v3838_v15 = vld [vmem:[%s5338_s1 + $0x608] ss:$16 sps:$4 sm:$0xff]   ;;  %v3843_v28 = vld [vmem:[%s5338_s1 + $0x624] ss:$16 sps:$4 sm:$0xff]  }
  0x88   :  { %1706 = vmatprep.subr.bf16.mxu0 %v3752_v29  ;;  %1870 = vmatprep.subr.bf16.mxu1 %v3755_v30  ;;  %v3846_v29 = vld [vmem:[%s5338_s1 + $0x62c] ss:$16 sps:$4 sm:$0xff]   ;;  %v3841_v30 = vld [vmem:[%s5338_s1 + $0x620] ss:$16 sps:$4 sm:$0xff]  }
  0x8b   :  { %1707 = vmatpush1.bf16.msra.mxu0 %v3750_v31  ;;  %1871 = vmatpush1.bf16.msra.mxu1 %v3753_v32  ;;  %v3844_v31 = vld [vmem:[%s5338_s1 + $0x628] ss:$16 sps:$4 sm:$0xff]   ;;  %v331_v32 = vcombine.high %v4332_v20, %v4332_v20  ;;  %v3847_v20 = vld [vmem:[%s5338_s1 + $0x640] ss:$16 sps:$4 sm:$0xff]  }
  0x8c   :  { %1708 = vmatprep.subr.bf16.mxu0 %v3758_v33  ;;  %1872 = vmatprep.subr.bf16.mxu1 %v3761_v34  ;;  %v3849_v33 = vld [vmem:[%s5338_s1 + $0x644] ss:$16 sps:$4 sm:$0xff]   ;;  %v3852_v34 = vld [vmem:[%s5338_s1 + $0x64c] ss:$16 sps:$4 sm:$0xff]  }
  0x8f   :  { %1709 = vmatpush1.bf16.msra.mxu0 %v3756_v35  ;;  %1873 = vmatpush1.bf16.msra.mxu1 %v3759_v36  ;;  %v3850_v35 = vld [vmem:[%s5338_s1 + $0x648] ss:$16 sps:$4 sm:$0xff]   ;;  %v3855_v36 = vld [vmem:[%s5338_s1 + $0x664] ss:$16 sps:$4 sm:$0xff]  }
  0x90   :  { %1710 = vmatprep.subr.bf16.mxu0 %v3764_v37  ;;  %1874 = vmatprep.subr.bf16.mxu1 %v3767_v38  ;;  %v3858_v37 = vld [vmem:[%s5338_s1 + $0x66c] ss:$16 sps:$4 sm:$0xff]   ;;  %v3853_v38 = vld [vmem:[%s5338_s1 + $0x660] ss:$16 sps:$4 sm:$0xff]  }
  0x93   :  { %1711 = vmatpush1.bf16.msra.mxu0 %v3762_v39  ;;  %1875 = vmatpush1.bf16.msra.mxu1 %v3765_v40  ;;  %v3856_v39 = vld [vmem:[%s5338_s1 + $0x668] ss:$16 sps:$4 sm:$0xff]   ;;  %v3861_v40 = vld [vmem:[%s5338_s1 + $0x684] ss:$16 sps:$4 sm:$0xff]  }
  0x94   :  { %1712 = vmatprep.subr.bf16.mxu0 %v3770_v41  ;;  %1876 = vmatprep.subr.bf16.mxu1 %v3773_v42  ;;  %v3864_v41 = vld [vmem:[%s5338_s1 + $0x68c] ss:$16 sps:$4 sm:$0xff]   ;;  %v3859_v42 = vld [vmem:[%s5338_s1 + $0x680] ss:$16 sps:$4 sm:$0xff]  }
  0x97   :  { %1713 = vmatpush1.bf16.msra.mxu0 %v3768_v44  ;;  %1877 = vmatpush1.bf16.msra.mxu1 %v3771_v45  ;;  %v3862_v44 = vld [vmem:[%s5338_s1 + $0x688] ss:$16 sps:$4 sm:$0xff]   ;;  %v3867_v45 = vld [vmem:[%s5338_s1 + $0x6a4] ss:$16 sps:$4 sm:$0xff]  }
  0x98   :  { %1714 = vmatprep.subr.bf16.mxu0 %v3776_v46  ;;  %1878 = vmatprep.subr.bf16.mxu1 %v3779_v47  ;;  %v3870_v46 = vld [vmem:[%s5338_s1 + $0x6ac] ss:$16 sps:$4 sm:$0xff]   ;;  %v3865_v47 = vld [vmem:[%s5338_s1 + $0x6a0] ss:$16 sps:$4 sm:$0xff]  }
  0x9b   :  { %1715 = vmatpush1.bf16.msra.mxu0 %v3774_v48  ;;  %1879 = vmatpush1.bf16.msra.mxu1 %v3777_v49  ;;  %v3868_v48 = vld [vmem:[%s5338_s1 + $0x6a8] ss:$16 sps:$4 sm:$0xff]   ;;  %v3873_v49 = vld [vmem:[%s5338_s1 + $0x6c4] ss:$16 sps:$4 sm:$0xff]  }
  0x9c   :  { %1716 = vmatprep.subr.bf16.mxu0 %v3782_v50  ;;  %1880 = vmatprep.subr.bf16.mxu1 %v3785_v51  ;;  %v3876_v50 = vld [vmem:[%s5338_s1 + $0x6cc] ss:$16 sps:$4 sm:$0xff]  }
  0x9f   :  { %1717 = vmatpush1.bf16.msra.mxu0 %v3780_v52  ;;  %1881 = vmatpush1.bf16.msra.mxu1 %v3783_v53 }
  0xa0   :  { %1718 = vmatprep.subr.bf16.mxu0 %v3788_v54  ;;  %1882 = vmatprep.subr.bf16.mxu1 %v3791_v55 }
  0xa3   :  { %1719 = vmatpush1.bf16.msra.mxu0 %v3786_v56  ;;  %1883 = vmatpush1.bf16.msra.mxu1 %v3789_v57 }
  0xa4   :  { %1720 = vmatprep.subr.bf16.mxu0 %v3794_v58  ;;  %1884 = vmatprep.subr.bf16.mxu1 %v3797_v59 }
  0xa7   :  { %1721 = vmatpush1.bf16.msra.mxu0 %v3792_v60  ;;  %1885 = vmatpush1.bf16.msra.mxu1 %v3795_v61 }
  0xa8   :  { %1722 = vmatprep.subr.bf16.mxu0 %v3800_v62  ;;  %1886 = vmatprep.subr.bf16.mxu1 %v3803_v63 }
  0xab   :  { %1723 = vmatpush1.bf16.msra.mxu0 %v3798_v0  ;;  %1887 = vmatpush1.bf16.msra.mxu1 %v3801_v1 }
  0xac   :  { %1724 = vmatprep.subr.bf16.mxu0 %v3806_v2  ;;  %1888 = vmatprep.subr.bf16.mxu1 %v3809_v3 }
  0xaf   :  { %1725 = vmatpush1.bf16.msra.mxu0 %v3804_v4  ;;  %1889 = vmatpush1.bf16.msra.mxu1 %v3807_v5 }
  0xb0   :  { %1726 = vmatprep.subr.bf16.mxu0 %v3812_v6  ;;  %1890 = vmatprep.subr.bf16.mxu1 %v3815_v7 }
  0xb3   :  { %1727 = vmatpush1.bf16.msra.mxu0 %v3810_v8  ;;  %1891 = vmatpush1.bf16.msra.mxu1 %v3813_v9 }
  0xb4   :  { %1728 = vmatprep.subr.bf16.mxu0 %v3818_v10  ;;  %1892 = vmatprep.subr.bf16.mxu1 %v3821_v11 }
  0xb7   :  { %1729 = vmatpush1.bf16.msra.mxu0 %v3816_v12  ;;  %1893 = vmatpush1.bf16.msra.mxu1 %v3819_v13 }
  0xb8   :  { %1730 = vmatprep.subr.bf16.mxu0 %v3824_v14  ;;  %1894 = vmatprep.subr.bf16.mxu1 %v3827_v16 }
  0xbb   :  { %1731 = vmatpush1.bf16.msra.mxu0 %v3822_v17  ;;  %1895 = vmatpush1.bf16.msra.mxu1 %v3825_v18 }
  0xbc   :  { %1732 = vmatprep.subr.bf16.mxu0 %v3830_v19  ;;  %1896 = vmatprep.subr.bf16.mxu1 %v3833_v22 }
  0xbf   :  { %1733 = vmatpush1.bf16.msra.mxu0 %v3828_v23  ;;  %1897 = vmatpush1.bf16.msra.mxu1 %v3831_v24 }
  0xc0   :  { %1743 = vmatprep.subr.bf16.mxu0 %v3837_v25  ;;  %1907 = vmatprep.subr.bf16.mxu1 %v3840_v26 }
  0xc2   :  { %1735 = vmatmul.mubr.bf16.vlgmr.msra.gmra.mrb[0].mxu0 %v4335_v21  ;;  %1899 = vmatmul.mubr.bf16.vlgmr.msra.gmra.mrb[0].mxu1 %v4335_v21 }
  0xc3   :  { %1744 = vmatpush1.bf16.msra.mxu0 %v3835_v27  ;;  %1908 = vmatpush1.bf16.msra.mxu1 %v3838_v15 }
  0xc4   :  { %1745 = vmatprep.subr.bf16.mxu0 %v3843_v28  ;;  %1909 = vmatprep.subr.bf16.mxu1 %v3846_v29 }
  0xc5   :  { %1775 = vmatprep.mubr.bf16.mxu0 %v331_v32  ;;  %1939 = vmatprep.mubr.bf16.mxu1 %v331_v32 }
  0xc7   :  { %1746 = vmatpush1.bf16.msra.mxu0 %v3841_v30  ;;  %1910 = vmatpush1.bf16.msra.mxu1 %v3844_v31 }
  0xc8   :  { %1747 = vmatprep.subr.bf16.mxu0 %v3849_v33  ;;  %1911 = vmatprep.subr.bf16.mxu1 %v3852_v34 }
  0xcb   :  { %1748 = vmatpush1.bf16.msra.mxu0 %v3847_v20  ;;  %1912 = vmatpush1.bf16.msra.mxu1 %v3850_v35 }
  0xcc   :  { %1749 = vmatprep.subr.bf16.mxu0 %v3855_v36  ;;  %1913 = vmatprep.subr.bf16.mxu1 %v3858_v37 }
  0xcf   :  { %1750 = vmatpush1.bf16.msra.mxu0 %v3853_v38  ;;  %1914 = vmatpush1.bf16.msra.mxu1 %v3856_v39 }
  0xd0   :  { %1751 = vmatprep.subr.bf16.mxu0 %v3861_v40  ;;  %1915 = vmatprep.subr.bf16.mxu1 %v3864_v41 }
  0xd3   :  { %1752 = vmatpush1.bf16.msra.mxu0 %v3859_v42  ;;  %1916 = vmatpush1.bf16.msra.mxu1 %v3862_v44 }
  0xd4   :  { %1753 = vmatprep.subr.bf16.mxu0 %v3867_v45  ;;  %1917 = vmatprep.subr.bf16.mxu1 %v3870_v46 }
  0xd5   :  { %11 = vsyncpa [#allocation3], 0  ;;  %v3871_v51 = vld [vmem:[%s5338_s1 + $0x6c0] ss:$16 sps:$4 sm:$0xff]   ;;  %v3874_v52 = vld [vmem:[%s5338_s1 + $0x6c8] ss:$16 sps:$4 sm:$0xff]   ;;  %v329_v28 = vcombine.high %v4335_v21, %v4335_v21 }
  0xd6   :  { %v3879_v53 = vld [vmem:[%s5338_s1 + $0x6e4] ss:$16 sps:$4 sm:$0xff]   ;;  %v3882_v54 = vld [vmem:[%s5338_s1 + $0x6ec] ss:$16 sps:$4 sm:$0xff]   ;;  %v3877_v55 = vld [vmem:[%s5338_s1 + $0x6e0] ss:$16 sps:$4 sm:$0xff]  }
  0xd7   :  { %1754 = vmatpush1.bf16.msra.mxu0 %v3865_v47  ;;  %1918 = vmatpush1.bf16.msra.mxu1 %v3868_v48  ;;  %v3880_v56 = vld [vmem:[%s5338_s1 + $0x6e8] ss:$16 sps:$4 sm:$0xff]   ;;  %v3885_v57 = vld [vmem:[%s5338_s1 + $0x704] ss:$16 sps:$4 sm:$0xff]   ;;  %v3888_v58 = vld [vmem:[%s5338_s1 + $0x70c] ss:$16 sps:$4 sm:$0xff]  }
  0xd8   :  { %1755 = vmatprep.subr.bf16.mxu0 %v3873_v49  ;;  %1919 = vmatprep.subr.bf16.mxu1 %v3876_v50  ;;  %v3883_v59 = vld [vmem:[%s5338_s1 + $0x700] ss:$16 sps:$4 sm:$0xff]   ;;  %v3886_v60 = vld [vmem:[%s5338_s1 + $0x708] ss:$16 sps:$4 sm:$0xff]   ;;  %v3891_v61 = vld [vmem:[%s5338_s1 + $0x724] ss:$16 sps:$4 sm:$0xff]  }
  0xd9   :  { %v3894_v62 = vld [vmem:[%s5338_s1 + $0x72c] ss:$16 sps:$4 sm:$0xff]   ;;  %v3889_v63 = vld [vmem:[%s5338_s1 + $0x720] ss:$16 sps:$4 sm:$0xff]   ;;  %v3892_v0 = vld [vmem:[%s5338_s1 + $0x728] ss:$16 sps:$4 sm:$0xff]  }
  0xda   :  { %v3897_v1 = vld [vmem:[%s5338_s1 + $0x744] ss:$16 sps:$4 sm:$0xff]   ;;  %v3900_v2 = vld [vmem:[%s5338_s1 + $0x74c] ss:$16 sps:$4 sm:$0xff]   ;;  %v3895_v3 = vld [vmem:[%s5338_s1 + $0x740] ss:$16 sps:$4 sm:$0xff]  }
  0xdb   :  { %1756 = vmatpush1.bf16.msra.mxu0 %v3871_v51  ;;  %1920 = vmatpush1.bf16.msra.mxu1 %v3874_v52  ;;  %v3898_v4 = vld [vmem:[%s5338_s1 + $0x748] ss:$16 sps:$4 sm:$0xff]   ;;  %v3903_v5 = vld [vmem:[%s5338_s1 + $0x764] ss:$16 sps:$4 sm:$0xff]   ;;  %v3906_v6 = vld [vmem:[%s5338_s1 + $0x76c] ss:$16 sps:$4 sm:$0xff]  }
  0xdc   :  { %1757 = vmatprep.subr.bf16.mxu0 %v3879_v53  ;;  %1921 = vmatprep.subr.bf16.mxu1 %v3882_v54  ;;  %v3901_v7 = vld [vmem:[%s5338_s1 + $0x760] ss:$16 sps:$4 sm:$0xff]   ;;  %v3904_v8 = vld [vmem:[%s5338_s1 + $0x768] ss:$16 sps:$4 sm:$0xff]   ;;  %v3909_v9 = vld [vmem:[%s5338_s1 + $0x784] ss:$16 sps:$4 sm:$0xff]  }
  0xdd   :  { %v3912_v10 = vld [vmem:[%s5338_s1 + $0x78c] ss:$16 sps:$4 sm:$0xff]   ;;  %v3907_v11 = vld [vmem:[%s5338_s1 + $0x780] ss:$16 sps:$4 sm:$0xff]   ;;  %v3910_v12 = vld [vmem:[%s5338_s1 + $0x788] ss:$16 sps:$4 sm:$0xff]  }
  0xde   :  { %v3915_v13 = vld [vmem:[%s5338_s1 + $0x7a4] ss:$16 sps:$4 sm:$0xff]   ;;  %v3918_v14 = vld [vmem:[%s5338_s1 + $0x7ac] ss:$16 sps:$4 sm:$0xff]   ;;  %v3913_v16 = vld [vmem:[%s5338_s1 + $0x7a0] ss:$16 sps:$4 sm:$0xff]  }
  0xdf   :  { %1758 = vmatpush1.bf16.msra.mxu0 %v3877_v55  ;;  %1922 = vmatpush1.bf16.msra.mxu1 %v3880_v56  ;;  %v3916_v17 = vld [vmem:[%s5338_s1 + $0x7a8] ss:$16 sps:$4 sm:$0xff]   ;;  %v3921_v18 = vld [vmem:[%s5338_s1 + $0x7c4] ss:$16 sps:$4 sm:$0xff]   ;;  %v3924_v19 = vld [vmem:[%s5338_s1 + $0x7cc] ss:$16 sps:$4 sm:$0xff]  }
  0xe0   :  { %1759 = vmatprep.subr.bf16.mxu0 %v3885_v57  ;;  %1923 = vmatprep.subr.bf16.mxu1 %v3888_v58  ;;  %v3919_v22 = vld [vmem:[%s5338_s1 + $0x7c0] ss:$16 sps:$4 sm:$0xff]   ;;  %v3922_v23 = vld [vmem:[%s5338_s1 + $0x7c8] ss:$16 sps:$4 sm:$0xff]   ;;  %v3927_v24 = vld [vmem:[%s5338_s1 + $0x7e4] ss:$16 sps:$4 sm:$0xff]  }
  0xe1   :  { %v3930_v25 = vld [vmem:[%s5338_s1 + $0x7ec] ss:$16 sps:$4 sm:$0xff]   ;;  %v3925_v26 = vld [vmem:[%s5338_s1 + $0x7e0] ss:$16 sps:$4 sm:$0xff]   ;;  %v3928_v27 = vld [vmem:[%s5338_s1 + $0x7e8] ss:$16 sps:$4 sm:$0xff]  }
  0xe2   :  { %v3933_v15 = vld [vmem:[%s5339_s2 + $0x4] ss:$8 sps:$4 sm:$0xff]   ;;  %v3931_v29 = vld [vmem:[%s5339_s2] ss:$8 sps:$4 sm:$0xff]   ;;  %v3936_v30 = vld [vmem:[%s5339_s2 + $0x14] ss:$8 sps:$4 sm:$0xff]  }
  0xe3   :  { %1760 = vmatpush1.bf16.msra.mxu0 %v3883_v59  ;;  %1924 = vmatpush1.bf16.msra.mxu1 %v3886_v60  ;;  %v3934_v31 = vld [vmem:[%s5339_s2 + $0x10] ss:$8 sps:$4 sm:$0xff]   ;;  %v3939_v21 = vld [vmem:[%s5339_s2 + $0x24] ss:$8 sps:$4 sm:$0xff]   ;;  %v3937_v32 = vld [vmem:[%s5339_s2 + $0x20] ss:$8 sps:$4 sm:$0xff]  }
  0xe4   :  { %1761 = vmatprep.subr.bf16.mxu0 %v3891_v61  ;;  %1925 = vmatprep.subr.bf16.mxu1 %v3894_v62  ;;  %v3942_v33 = vld [vmem:[%s5339_s2 + $0x34] ss:$8 sps:$4 sm:$0xff]   ;;  %v3940_v34 = vld [vmem:[%s5339_s2 + $0x30] ss:$8 sps:$4 sm:$0xff]   ;;  %v3945_v20 = vld [vmem:[%s5339_s2 + $0x44] ss:$8 sps:$4 sm:$0xff]  }
  0xe5   :  { %v3943_v35 = vld [vmem:[%s5339_s2 + $0x40] ss:$8 sps:$4 sm:$0xff]   ;;  %v3948_v36 = vld [vmem:[%s5339_s2 + $0x54] ss:$8 sps:$4 sm:$0xff]   ;;  %v3946_v37 = vld [vmem:[%s5339_s2 + $0x50] ss:$8 sps:$4 sm:$0xff]  }
  0xe6   :  { %v3951_v38 = vld [vmem:[%s5339_s2 + $0x64] ss:$8 sps:$4 sm:$0xff]   ;;  %v3949_v39 = vld [vmem:[%s5339_s2 + $0x60] ss:$8 sps:$4 sm:$0xff]   ;;  %v3954_v40 = vld [vmem:[%s5339_s2 + $0x74] ss:$8 sps:$4 sm:$0xff]  }
  0xe7   :  { %1762 = vmatpush1.bf16.msra.mxu0 %v3889_v63  ;;  %1926 = vmatpush1.bf16.msra.mxu1 %v3892_v0  ;;  %v3952_v41 = vld [vmem:[%s5339_s2 + $0x70] ss:$8 sps:$4 sm:$0xff]   ;;  %v3957_v42 = vld [vmem:[%s5339_s2 + $0x84] ss:$8 sps:$4 sm:$0xff]   ;;  %v3955_v44 = vld [vmem:[%s5339_s2 + $0x80] ss:$8 sps:$4 sm:$0xff]  }
  0xe8   :  { %1763 = vmatprep.subr.bf16.mxu0 %v3897_v1  ;;  %1927 = vmatprep.subr.bf16.mxu1 %v3900_v2  ;;  %v3960_v45 = vld [vmem:[%s5339_s2 + $0x94] ss:$8 sps:$4 sm:$0xff]   ;;  %v3958_v46 = vld [vmem:[%s5339_s2 + $0x90] ss:$8 sps:$4 sm:$0xff]   ;;  %v3963_v47 = vld [vmem:[%s5339_s2 + $0xa4] ss:$8 sps:$4 sm:$0xff]  }
  0xe9   :  { %v3961_v48 = vld [vmem:[%s5339_s2 + $0xa0] ss:$8 sps:$4 sm:$0xff]   ;;  %v3966_v49 = vld [vmem:[%s5339_s2 + $0xb4] ss:$8 sps:$4 sm:$0xff]   ;;  %v3964_v50 = vld [vmem:[%s5339_s2 + $0xb0] ss:$8 sps:$4 sm:$0xff]  }
  0xea   :  { %v3969_v51 = vld [vmem:[%s5339_s2 + $0xc4] ss:$8 sps:$4 sm:$0xff]   ;;  %v3967_v52 = vld [vmem:[%s5339_s2 + $0xc0] ss:$8 sps:$4 sm:$0xff]   ;;  %v3972_v53 = vld [vmem:[%s5339_s2 + $0xd4] ss:$8 sps:$4 sm:$0xff]  }
  0xeb   :  { %1764 = vmatpush1.bf16.msra.mxu0 %v3895_v3  ;;  %1928 = vmatpush1.bf16.msra.mxu1 %v3898_v4  ;;  %v3970_v54 = vld [vmem:[%s5339_s2 + $0xd0] ss:$8 sps:$4 sm:$0xff]   ;;  %v3975_v55 = vld [vmem:[%s5339_s2 + $0xe4] ss:$8 sps:$4 sm:$0xff]   ;;  %v3973_v56 = vld [vmem:[%s5339_s2 + $0xe0] ss:$8 sps:$4 sm:$0xff]  }
  0xec   :  { %1765 = vmatprep.subr.bf16.mxu0 %v3903_v5  ;;  %1929 = vmatprep.subr.bf16.mxu1 %v3906_v6  ;;  %v3978_v57 = vld [vmem:[%s5339_s2 + $0xf4] ss:$8 sps:$4 sm:$0xff]   ;;  %v3976_v58 = vld [vmem:[%s5339_s2 + $0xf0] ss:$8 sps:$4 sm:$0xff]   ;;  %v3981_v59 = vld [vmem:[%s5339_s2 + $0x104] ss:$8 sps:$4 sm:$0xff]  }
  0xed   :  { %v2477_v60 = vld [vmem:[%s5340_s3 + $0x80] sm:$0xff]  ;;  %v2478_v61 = vld [vmem:[%s5340_s3 + $0x88] sm:$0xff]  ;;  %v2479_v1 = vld [vmem:[%s5340_s3 + $0x90] sm:$0xff]  ;;  %vm2430_vm4 = vcmask 1041408   ;;  %vm2643_vm5 = vcmask 130048   ;;  %vm2988_vm8 = vcmask 1024  }
  0xee   :  { %v2461_v62 = vld [vmem:[%s5340_s3] sm:$0xff]  ;;  %v5015_v63 = vpack.c.bf16 %v2478_v61, %v2477_v60  ;;  %v2462_v0 = vld [vmem:[%s5340_s3 + $0x8] sm:$0xff]  ;;  %v2480_v2 = vld [vmem:[%s5340_s3 + $0x98] sm:$0xff]  ;;  %vm2997_vm9 = vcmask 0  }
  0xef   :  { %1766 = vmatpush1.bf16.msra.mxu0 %v3901_v7  ;;  %1930 = vmatpush1.bf16.msra.mxu1 %v3904_v8  ;;  %v5026_v3 = vpack.c.bf16 %v2462_v0, %v2461_v62  ;;  %v5028_v4 = vpack.c.bf16 %v2480_v2, %v2479_v1  ;;  %v2463_v5 = vld [vmem:[%s5340_s3 + $0x10] sm:$0xff]  ;;  %v2464_v6 = vld [vmem:[%s5340_s3 + $0x18] sm:$0xff]  ;;  %v2481_v7 = vld [vmem:[%s5340_s3 + $0xa0] sm:$0xff] }
  0xf0   :  { %1767 = vmatprep.subr.bf16.mxu0 %v3909_v9  ;;  %1931 = vmatprep.subr.bf16.mxu1 %v3912_v10  ;;  %v2482_v8 = vld [vmem:[%s5340_s3 + $0xa8] sm:$0xff]  ;;  %v5044_v9 = vpack.c.bf16 %v2464_v6, %v2463_v5  ;;  %v4014_v62 = vld [vmem:[%s5339_s2 + $0x1b4] ss:$8 sps:$4 sm:$0xff]   ;;  %v4012_v0 = vld [vmem:[%s5339_s2 + $0x1b0] ss:$8 sps:$4 sm:$0xff]  }
  0xf1   :  { %v5047_v10 = vpack.c.bf16 %v2482_v8, %v2481_v7  ;;  %v4011_v60 = vld [vmem:[%s5339_s2 + $0x1a4] ss:$8 sps:$4 sm:$0xff]   ;;  %v4009_v61 = vld [vmem:[%s5339_s2 + $0x1a0] ss:$8 sps:$4 sm:$0xff]   ;;  %v4020_v5 = vld [vmem:[%s5339_s2 + $0x1d4] ss:$8 sps:$4 sm:$0xff]  }
  0xf2   :  { %v4017_v1 = vld [vmem:[%s5339_s2 + $0x1c4] ss:$8 sps:$4 sm:$0xff]   ;;  %v4015_v2 = vld [vmem:[%s5339_s2 + $0x1c0] ss:$8 sps:$4 sm:$0xff]   ;;  %v4018_v6 = vld [vmem:[%s5339_s2 + $0x1d0] ss:$8 sps:$4 sm:$0xff]  }
  0xf3   :  { %1768 = vmatpush1.bf16.msra.mxu0 %v3907_v11  ;;  %1932 = vmatpush1.bf16.msra.mxu1 %v3910_v12  ;;  %v2465_v11 = vld [vmem:[%s5340_s3 + $0x20] sm:$0xff]  ;;  %v2466_v12 = vld [vmem:[%s5340_s3 + $0x28] sm:$0xff] }
  0xf4   :  { %1769 = vmatprep.subr.bf16.mxu0 %v3915_v13  ;;  %1933 = vmatprep.subr.bf16.mxu1 %v3918_v14  ;;  %v2483_v13 = vld [vmem:[%s5340_s3 + $0xb0] sm:$0xff]  ;;  %v2484_v14 = vld [vmem:[%s5340_s3 + $0xb8] sm:$0xff]  ;;  %v4023_v7 = vld [vmem:[%s5339_s2 + $0x1e4] ss:$8 sps:$4 sm:$0xff]  }
  0xf5   :  { %v4021_v8 = vld [vmem:[%s5339_s2 + $0x1e0] ss:$8 sps:$4 sm:$0xff]  }
  0xf7   :  { %1770 = vmatpush1.bf16.msra.mxu0 %v3913_v16  ;;  %1934 = vmatpush1.bf16.msra.mxu1 %v3916_v17  ;;  %v5062_v16 = vpack.c.bf16 %v2466_v12, %v2465_v11  ;;  %v5065_v17 = vpack.c.bf16 %v2484_v14, %v2483_v13  ;;  %v4026_v11 = vld [vmem:[%s5339_s2 + $0x1f4] ss:$8 sps:$4 sm:$0xff]   ;;  %v4024_v13 = vld [vmem:[%s5339_s2 + $0x1f0] ss:$8 sps:$4 sm:$0xff]  }
  0xf8   :  { %1771 = vmatprep.subr.bf16.mxu0 %v3921_v18  ;;  %1935 = vmatprep.subr.bf16.mxu1 %v3924_v19  ;;  %v2467_v18 = vld [vmem:[%s5340_s3 + $0x30] sm:$0xff]  ;;  %v2468_v19 = vld [vmem:[%s5340_s3 + $0x38] sm:$0xff] }
  0xfb   :  { %1772 = vmatpush1.bf16.msra.mxu0 %v3919_v22  ;;  %1936 = vmatpush1.bf16.msra.mxu1 %v3922_v23  ;;  %v2485_v22 = vld [vmem:[%s5340_s3 + $0xc0] sm:$0xff]  ;;  %v2486_v23 = vld [vmem:[%s5340_s3 + $0xc8] sm:$0xff] }
  0xfc   :  { %1773 = vmatprep.subr.bf16.mxu0 %v3927_v24  ;;  %1937 = vmatprep.subr.bf16.mxu1 %v3930_v25  ;;  %v5080_v24 = vpack.c.bf16 %v2468_v19, %v2467_v18  ;;  %v5083_v25 = vpack.c.bf16 %v2486_v23, %v2485_v22  ;;  %v2469_v19 = vld [vmem:[%s5340_s3 + $0x40] sm:$0xff]  ;;  %v2470_v22 = vld [vmem:[%s5340_s3 + $0x48] sm:$0xff] }
  0xfd   :  { %v5191_v23 = vpack.c.bf16 %v2470_v22, %v2469_v19 }
  0xff   :  { %1774 = vmatpush1.bf16.msra.mxu0 %v3925_v26  ;;  %1938 = vmatpush1.bf16.msra.mxu1 %v3928_v27 }
 0x100   :  { %2348 = vmatprep.subr.bf16.mxu0 %v3933_v15  ;;  %3444 = vmatprep.subr.bf16.mxu1 %v5015_v63 }
 0x102   :  { %1776 = vmatmul.mubr.bf16.vlgmr.msra.gmra.mrb[0].mxu0 %v329_v28  ;;  %1940 = vmatmul.mubr.bf16.vlgmr.msra.gmra.mrb[0].mxu1 %v329_v28 }
 0x103   :  { %2349 = vmatpush1.bf16.msra.mxu0 %v3931_v29  ;;  %3446 = vmatpush3.bf16.msra.mxu1 %v5026_v3 }
 0x104   :  { %2350 = vmatprep.subr.bf16.mxu0 %v3936_v30  ;;  %3448 = vmatprep.subr.bf16.mxu1 %v5028_v4 }
 0x107   :  { %2351 = vmatpush1.bf16.msra.mxu0 %v3934_v31  ;;  %3450 = vmatpush3.bf16.msra.mxu1 %v5044_v9 }
 0x108   :  { %2352 = vmatprep.subr.bf16.mxu0 %v3939_v21  ;;  %3452 = vmatprep.subr.bf16.mxu1 %v5047_v10 }
 0x10b   :  { %2353 = vmatpush1.bf16.msra.mxu0 %v3937_v32  ;;  %3454 = vmatpush3.bf16.msra.mxu1 %v5062_v16 }
 0x10c   :  { %2354 = vmatprep.subr.bf16.mxu0 %v3942_v33  ;;  %3456 = vmatprep.subr.bf16.mxu1 %v5065_v17 }
 0x10f   :  { %2355 = vmatpush1.bf16.msra.mxu0 %v3940_v34  ;;  %3458 = vmatpush3.bf16.msra.mxu1 %v5080_v24 }
 0x110   :  { %2356 = vmatprep.subr.bf16.mxu0 %v3945_v20  ;;  %3460 = vmatprep.subr.bf16.mxu1 %v5083_v25 }
 0x113   :  { %2357 = vmatpush1.bf16.msra.mxu0 %v3943_v35  ;;  %3462 = vmatpush3.bf16.msra.mxu1 %v5191_v23 }
 0x114   :  { %2358 = vmatprep.subr.bf16.mxu0 %v3948_v36 }
 0x117   :  { %2359 = vmatpush1.bf16.msra.mxu0 %v3946_v37 }
 0x118   :  { %2360 = vmatprep.subr.bf16.mxu0 %v3951_v38  ;;  %v3979_v38 = vld [vmem:[%s5339_s2 + $0x100] ss:$8 sps:$4 sm:$0xff]  }
 0x11b   :  { %2361 = vmatpush1.bf16.msra.mxu0 %v3949_v39 }
 0x11c   :  { %2362 = vmatprep.subr.bf16.mxu0 %v3954_v40  ;;  %v3984_v40 = vld [vmem:[%s5339_s2 + $0x114] ss:$8 sps:$4 sm:$0xff]  }
 0x11f   :  { %2363 = vmatpush1.bf16.msra.mxu0 %v3952_v41 }
 0x120   :  { %2364 = vmatprep.subr.bf16.mxu0 %v3957_v42  ;;  %v3982_v42 = vld [vmem:[%s5339_s2 + $0x110] ss:$8 sps:$4 sm:$0xff]  }
 0x123   :  { %2365 = vmatpush1.bf16.msra.mxu0 %v3955_v44  ;;  %v3987_v44 = vld [vmem:[%s5339_s2 + $0x124] ss:$8 sps:$4 sm:$0xff]  }
 0x124   :  { %2366 = vmatprep.subr.bf16.mxu0 %v3960_v45  ;;  %v3985_v45 = vld [vmem:[%s5339_s2 + $0x120] ss:$8 sps:$4 sm:$0xff]  }
 0x127   :  { %2367 = vmatpush1.bf16.msra.mxu0 %v3958_v46  ;;  %v3990_v46 = vld [vmem:[%s5339_s2 + $0x134] ss:$8 sps:$4 sm:$0xff]  }
 0x128   :  { %2368 = vmatprep.subr.bf16.mxu0 %v3963_v47  ;;  %v3988_v47 = vld [vmem:[%s5339_s2 + $0x130] ss:$8 sps:$4 sm:$0xff]  }
 0x12b   :  { %2369 = vmatpush1.bf16.msra.mxu0 %v3961_v48  ;;  %v3993_v48 = vld [vmem:[%s5339_s2 + $0x144] ss:$8 sps:$4 sm:$0xff]  }
 0x12c   :  { %2370 = vmatprep.subr.bf16.mxu0 %v3966_v49  ;;  %v3991_v49 = vld [vmem:[%s5339_s2 + $0x140] ss:$8 sps:$4 sm:$0xff]  }
 0x12f   :  { %2371 = vmatpush1.bf16.msra.mxu0 %v3964_v50  ;;  %v3996_v50 = vld [vmem:[%s5339_s2 + $0x154] ss:$8 sps:$4 sm:$0xff]  }
 0x130   :  { %2372 = vmatprep.subr.bf16.mxu0 %v3969_v51  ;;  %v3994_v51 = vld [vmem:[%s5339_s2 + $0x150] ss:$8 sps:$4 sm:$0xff]  }
 0x133   :  { %2373 = vmatpush1.bf16.msra.mxu0 %v3967_v52  ;;  %v3999_v52 = vld [vmem:[%s5339_s2 + $0x164] ss:$8 sps:$4 sm:$0xff]  }
 0x134   :  { %2374 = vmatprep.subr.bf16.mxu0 %v3972_v53  ;;  %v3997_v53 = vld [vmem:[%s5339_s2 + $0x160] ss:$8 sps:$4 sm:$0xff]  }
 0x137   :  { %2375 = vmatpush1.bf16.msra.mxu0 %v3970_v54  ;;  %v4002_v54 = vld [vmem:[%s5339_s2 + $0x174] ss:$8 sps:$4 sm:$0xff]  }
 0x138   :  { %2376 = vmatprep.subr.bf16.mxu0 %v3975_v55  ;;  %v4000_v55 = vld [vmem:[%s5339_s2 + $0x170] ss:$8 sps:$4 sm:$0xff]  }
 0x13b   :  { %2377 = vmatpush1.bf16.msra.mxu0 %v3973_v56  ;;  %v4005_v56 = vld [vmem:[%s5339_s2 + $0x184] ss:$8 sps:$4 sm:$0xff]  }
 0x13c   :  { %2378 = vmatprep.subr.bf16.mxu0 %v3978_v57  ;;  %v4003_v57 = vld [vmem:[%s5339_s2 + $0x180] ss:$8 sps:$4 sm:$0xff]  }
 0x13f   :  { %2379 = vmatpush1.bf16.msra.mxu0 %v3976_v58  ;;  %v4008_v58 = vld [vmem:[%s5339_s2 + $0x194] ss:$8 sps:$4 sm:$0xff]  }
 0x140   :  { %2389 = vmatprep.subr.bf16.mxu0 %v3981_v59  ;;  %v4006_v59 = vld [vmem:[%s5339_s2 + $0x190] ss:$8 sps:$4 sm:$0xff]  }
 0x1d5   :  { %v1777_v26 = vpop.f32.mrb[0].mxu0  ;;  %v5087_v27 = vpop.f32.mrb[0].mxu1 }
 0x1d6   :  { %vm1948_vm0 = vcmp.ge.f32.partialorder %v1777_v26, 0.0  ;;  %v1952_v15 = vmul.f32 0.2, %v1777_v26  ;;  %v1779_v28 = vpop.f32.mrb[1].mxu0  ;;  %v1943_v29 = vpop.f32.mrb[1].mxu1  ;;  %vm1950_vm3 = vcmp.ge.f32.partialorder %v5087_v27, 0.0 }
 0x1d7   :  { %vm1949_vm1 = vcmp.ge.f32.partialorder %v1779_v28, 0.0  ;;  %v1953_v30 = vmul.f32 0.2, %v1779_v28  ;;  %v1781_v31 = vpop.f32.mrb[2].mxu0  ;;  %v1945_v21 = vpop.f32.mrb[2].mxu1  ;;  %vm1951_vm2 = vcmp.ge.f32.partialorder %v1943_v29, 0.0 }
 0x1d8   :  { %v1956_v32 = vsel %vm1948_vm0, %v1777_v26, %v1952_v15  ;;  %v1955_v33 = vmul.f32 0.2, %v1943_v29  ;;  %v1782_v34 = vpop.f32.mrb[3].mxu0  ;;  %v1946_v20 = vpop.f32.mrb[3].mxu1  ;;  %v1954_v12 = vmul.f32 0.2, %v5087_v27 }
 0x1d9   :  { %v1957_v35 = vsel %vm1949_vm1, %v1779_v28, %v1953_v30  ;;  %v1960_v39 = vpack.c.bf16 %v1956_v32, %v1956_v32  ;;  %v2487_v26 = vld [vmem:[%s5340_s3 + $0xd0] sm:$0xff]  ;;  %v2489_v31 = vld [vmem:[%s5340_s3 + $0xe0] sm:$0xff]  ;;  %v2490_v21 = vld [vmem:[%s5340_s3 + $0xe8] sm:$0xff] }
 0x1da   :  { %v1961_v36 = vpack.c.bf16 %v1957_v35, %v1957_v35  ;;  %v1959_v37 = vsel %vm1951_vm2, %v1943_v29, %v1955_v33  ;;  %v1958_v14 = vsel %vm1950_vm3, %v5087_v27, %v1954_v12  ;;  %v2488_v27 = vld [vmem:[%s5340_s3 + $0xd8] sm:$0xff]  ;;  %v2471_v28 = vld [vmem:[%s5340_s3 + $0x50] sm:$0xff]  ;;  %v3467_v32 = vpack.c.bf16 %v2490_v21, %v2489_v31  ;;  %v2473_v33 = vld [vmem:[%s5340_s3 + $0x60] sm:$0xff] }
 0x1db   :  { %v1963_v41 = vpack.c.bf16 %v1959_v37, %v1959_v37  ;;  %v1962_v18 = vpack.c.bf16 %v1958_v14, %v1958_v14  ;;  %v5200_v15 = vpack.c.bf16 %v2488_v27, %v2487_v26  ;;  %v2472_v29 = vld [vmem:[%s5340_s3 + $0x58] sm:$0xff]  ;;  %v2474_v34 = vld [vmem:[%s5340_s3 + $0x68] sm:$0xff]  ;;  %v2491_v35 = vld [vmem:[%s5340_s3 + $0xf0] sm:$0xff]  ;;  %v4070_v14 = vmov 0.0  }
 0x1dc   :  { %2380 = vmatprep.mubr.bf16.mxu0 %v1961_v36  ;;  %v5208_v30 = vpack.c.bf16 %v2472_v29, %v2471_v28  ;;  %v3469_v20 = vpack.c.bf16 %v2474_v34, %v2473_v33  ;;  %v2492_v36 = vld [vmem:[%s5340_s3 + $0xf8] sm:$0xff]  ;;  %v2641_v12 = vld [vmem:[%s5341_s4 + $0x10] sm:$0xff]  ;;  %v4028_v33 = vld [vmem:[%s5342_s5] sm:$0xff]  }
 0x1dd   :  { %2381 = vmatmul.mubr.bf16.vlgmr.msra.gmra.mrb[4].mxu0 %v1960_v39  ;;  %3464 = vmatprep.subr.bf16.mxu1 %v5200_v15  ;;  %v3471_v37 = vpack.c.bf16 %v2492_v36, %v2491_v35  ;;  %v2476_v39 = vld [vmem:[%s5340_s3 + $0x78] sm:$0xff]  ;;  %v4029_v34 = vld [vmem:[%s5342_s5 + $0x48] sm:$0xff]   ;;  %v4031_v35 = vld [vmem:[%s5342_s5 + $0x50] sm:$0xff]  }
 0x1de   :  { %2390 = vmatpush1.bf16.msra.mxu0 %v3979_v38  ;;  %2421 = vmatprep.mubr.bf16.mxu0 %v1963_v41  ;;  %v2475_v38 = vld [vmem:[%s5340_s3 + $0x70] sm:$0xff] }
 0x1df   :  { %2391 = vmatprep.subr.bf16.mxu0 %v3984_v40  ;;  %3466 = vmatpush3.bf16.msra.mxu1 %v5208_v30  ;;  %v3473_v40 = vpack.c.bf16 %v2476_v39, %v2475_v38  ;;  %v4032_v36 = vld [vmem:[%s5342_s5 + $0x10] sm:$0xff]   ;;  %v4034_v38 = vld [vmem:[%s5342_s5 + $0x18] sm:$0xff]   ;;  %v4035_v39 = vld [vmem:[%s5342_s5 + $0x60] sm:$0xff]  }
 0x1e0   :  { %3468 = vmatprep.subr.bf16.mxu1 %v3467_v32 }
 0x1e2   :  { %2392 = vmatpush1.bf16.msra.mxu0 %v3982_v42 }
 0x1e3   :  { %2393 = vmatprep.subr.bf16.mxu0 %v3987_v44  ;;  %3470 = vmatpush3.bf16.msra.mxu1 %v3469_v20 }
 0x1e4   :  { %3472 = vmatprep.subr.bf16.mxu1 %v3471_v37 }
 0x1e6   :  { %2394 = vmatpush1.bf16.msra.mxu0 %v3985_v45 }
 0x1e7   :  { %2395 = vmatprep.subr.bf16.mxu0 %v3990_v46  ;;  %3474 = vmatpush3.bf16.msra.mxu1 %v3473_v40 }
 0x1e8   :  { %3476 = vmatprep.subr.bf16.mxu1 %v5015_v63 }
 0x1ea   :  { %2396 = vmatpush1.bf16.msra.mxu0 %v3988_v47 }
 0x1eb   :  { %2397 = vmatprep.subr.bf16.mxu0 %v3993_v48 }
 0x1ee   :  { %2398 = vmatpush1.bf16.msra.mxu0 %v3991_v49 }
 0x1ef   :  { %2399 = vmatprep.subr.bf16.mxu0 %v3996_v50 }
 0x1f2   :  { %2400 = vmatpush1.bf16.msra.mxu0 %v3994_v51 }
 0x1f3   :  { %2401 = vmatprep.subr.bf16.mxu0 %v3999_v52 }
 0x1f6   :  { %2402 = vmatpush1.bf16.msra.mxu0 %v3997_v53 }
 0x1f7   :  { %2403 = vmatprep.subr.bf16.mxu0 %v4002_v54 }
 0x1fa   :  { %2404 = vmatpush1.bf16.msra.mxu0 %v4000_v55 }
 0x1fb   :  { %2405 = vmatprep.subr.bf16.mxu0 %v4005_v56 }
 0x1fe   :  { %2406 = vmatpush1.bf16.msra.mxu0 %v4003_v57 }
 0x1ff   :  { %2407 = vmatprep.subr.bf16.mxu0 %v4008_v58 }
 0x202   :  { %2408 = vmatpush1.bf16.msra.mxu0 %v4006_v59 }
 0x203   :  { %2409 = vmatprep.subr.bf16.mxu0 %v4011_v60 }
 0x206   :  { %2410 = vmatpush1.bf16.msra.mxu0 %v4009_v61 }
 0x207   :  { %2411 = vmatprep.subr.bf16.mxu0 %v4014_v62 }
 0x20a   :  { %2412 = vmatpush1.bf16.msra.mxu0 %v4012_v0 }
 0x20b   :  { %2413 = vmatprep.subr.bf16.mxu0 %v4017_v1 }
 0x20e   :  { %2414 = vmatpush1.bf16.msra.mxu0 %v4015_v2 }
 0x20f   :  { %2415 = vmatprep.subr.bf16.mxu0 %v4020_v5 }
 0x212   :  { %2416 = vmatpush1.bf16.msra.mxu0 %v4018_v6 }
 0x213   :  { %2417 = vmatprep.subr.bf16.mxu0 %v4023_v7 }
 0x216   :  { %2418 = vmatpush1.bf16.msra.mxu0 %v4021_v8 }
 0x217   :  { %2419 = vmatprep.subr.bf16.mxu0 %v4026_v11  ;;  %v2639_v11 = vld [vmem:[%s5341_s4] sm:$0xff] }
 0x21a   :  { %2420 = vmatpush1.bf16.msra.mxu0 %v4024_v13  ;;  %v3509_v13 = vpack.c.bf16 %v2641_v12, %v2639_v11 }
 0x21d   :  { %2422 = vmatmul.mubr.bf16.vlgmr.msra.gmra.mrb[4].mxu0 %v1962_v18 }
 0x2f0   :  { %v5237_v41 = vpop.f32.mrb[4].mxu0 }
 0x2f1   :  { %v2431_v42 = vsel %vm2430_vm4, %v5237_v41, 0.0  ;;  %v5241_v44 = vpop.f32.mrb[5].mxu0  ;;  %v2445_v6 = vmul.f32 %v5237_v41, %v5237_v41 }
 0x2f2   :  { %v2432_v45 = vrot.slane %v2431_v42, 4  ;;  %v2438_v46 = vsel %vm2430_vm4, %v5241_v44, 0.0  ;;  %v2446_v47 = vmul.f32 %v5241_v44, %v5241_v44  ;;  %v2427_v48 = vpop.f32.mrb[6].mxu0 }
 0x2f3   :  { %v2439_v49 = vrot.slane %v2438_v46, 4  ;;  %v2428_v50 = vpop.f32.mrb[7].mxu0  ;;  %v2447_v7 = vsel %vm2430_vm4, %v2445_v6, 0.0  ;;  %v4041_v48 = vld [vmem:[%s5342_s5 + $0x78] sm:$0xff]  }
 0x2f4   :  { %v2433_v51 = vadd.f32 %v2432_v45, %v2431_v42  ;;  %v2454_v63 = vsel %vm2430_vm4, %v2446_v47, 0.0  ;;  %v2448_v8 = vrot.slane %v2447_v7, 4  ;;  %v4037_v42 = vld [vmem:[%s5342_s5 + $0x68] sm:$0xff]   ;;  %v4040_v47 = vld [vmem:[%s5342_s5 + $0x30] sm:$0xff]   ;;  %v2794_v50 = vsub.s32 0, %v4224_v43 }
 0x2f5   :  { %v2440_v52 = vadd.f32 %v2439_v49, %v2438_v46  ;;  %v2455_v53 = vrot.slane %v2454_v63, 4  ;;  %v4038_v45 = vld [vmem:[%s5342_s5 + $0x28] sm:$0xff]   ;;  %v4039_v46 = vld [vmem:[%s5342_s5 + $0x70] sm:$0xff]   ;;  %v4042_v49 = vld [vmem:[%s5342_s5 + $0x38] sm:$0xff]  }
 0x2f6   :  { %v2434_v54 = vrot.slane %v2433_v51, 2 }
 0x2f7   :  { %v2441_v55 = vrot.slane %v2440_v52, 2  ;;  %v2456_v56 = vadd.f32 %v2455_v53, %v2454_v63 }
 0x2f8   :  { %v2435_v57 = vadd.f32 %v2434_v54, %v2433_v51 }
 0x2f9   :  { %v2442_v58 = vadd.f32 %v2441_v55, %v2440_v52  ;;  %v2457_v59 = vrot.slane %v2456_v56, 2 }
 0x2fa   :  { %v2436_v60 = vrot.slane %v2435_v57, 1 }
 0x2fb   :  { %v2443_v61 = vrot.slane %v2442_v58, 1  ;;  %v2458_v62 = vadd.f32 %v2457_v59, %v2456_v56 }
 0x2fc   :  { %v2437_v2 = vadd.f32 %v2436_v60, %v2435_v57 }
 0x2fd   :  { %v2444_v0 = vadd.f32 %v2443_v61, %v2442_v58  ;;  %v2459_v1 = vrot.slane %v2458_v62, 1 }
 0x2ff   :  { %2557 = vmatprep.mubr.f32.mxu1 %v2444_v0  ;;  %v2460_v5 = vadd.f32 %v2459_v1, %v2458_v62 }
 0x300   :  { %2558 = vmatmul.mubr.f32.vlgmr.msra.gmra.mrb[4].mxu1 %v2437_v2 }
 0x301   :  { %3478 = vmatpush3.bf16.msra.mxu1 %v5026_v3  ;;  %2628 = vmatprep.mubr.f32.mxu1 %v2460_v5  ;;  %v2449_v3 = vadd.f32 %v2448_v8, %v2447_v7 }
 0x302   :  { %3480 = vmatprep.subr.bf16.mxu1 %v5028_v4 }
 0x303   :  { %v2450_v4 = vrot.slane %v2449_v3, 2 }
 0x305   :  { %3482 = vmatpush3.bf16.msra.mxu1 %v5044_v9  ;;  %v2451_v9 = vadd.f32 %v2450_v4, %v2449_v3 }
 0x306   :  { %3484 = vmatprep.subr.bf16.mxu1 %v5047_v10 }
 0x307   :  { %v2452_v10 = vrot.slane %v2451_v9, 1 }
 0x309   :  { %3486 = vmatpush3.bf16.msra.mxu1 %v5062_v16  ;;  %v2453_v16 = vadd.f32 %v2452_v10, %v2451_v9 }
 0x30a   :  { %3488 = vmatprep.subr.bf16.mxu1 %v5065_v17  ;;  %v2640_v17 = vld [vmem:[%s5341_s4 + $0x8] sm:$0xff] }
 0x30d   :  { %3490 = vmatpush3.bf16.msra.mxu1 %v5080_v24  ;;  %v2642_v24 = vld [vmem:[%s5341_s4 + $0x18] sm:$0xff] }
 0x30e   :  { %3492 = vmatprep.subr.bf16.mxu1 %v5083_v25  ;;  %v3507_v25 = vpack.c.bf16 %v2642_v24, %v2640_v17 }
 0x311   :  { %3494 = vmatpush3.bf16.msra.mxu1 %v5191_v23 }
 0x312   :  { %3496 = vmatprep.subr.bf16.mxu1 %v5200_v15 }
 0x315   :  { %3498 = vmatpush3.bf16.msra.mxu1 %v5208_v30 }
 0x316   :  { %3500 = vmatprep.subr.bf16.mxu1 %v3467_v32  ;;  %v4027_v32 = vld [vmem:[%s5342_s5 + $0x40] sm:$0xff]  }
 0x319   :  { %3502 = vmatpush3.bf16.msra.mxu1 %v3469_v20  ;;  %v4030_v20 = vld [vmem:[%s5342_s5 + $0x8] sm:$0xff]  }
 0x31a   :  { %3504 = vmatprep.subr.bf16.mxu1 %v3471_v37  ;;  %v4033_v37 = vld [vmem:[%s5342_s5 + $0x58] sm:$0xff]  }
 0x31d   :  { %3506 = vmatpush3.bf16.msra.mxu1 %v3473_v40  ;;  %v4036_v40 = vld [vmem:[%s5342_s5 + $0x20] sm:$0xff]   ;;  %s4071_s5 = smov [#allocation2]  }
 0x31e   :  { %3508 = vmatprep.subr.bf16.mxu1 %v3507_v25  ;;  %s3005_s29 = sshll.u32 %s4071_s5, 4  ;;  %s3006_s29 = int_to_ptr.vmem [resolvable:$true] %s3005_s29 }
 0x31f   :  { %s4045_s30 = scalar_lea.vmem %s3006_s29, 16  ;;  %s4049_s7 = scalar_lea.vmem %s3006_s29, 32 }
 0x320   :  { %2629 = vmatmul.mubr.f32.vlgmr.msra.gmra.mrb[6].mxu1 %v2453_v16  ;;  %p4046_p0 = scmp.ne.s32.totalorder %s3006_s29, %s4045_s30  ;;  %p4050_p1 = scmp.lt.s32.totalorder %s3006_s29, %s3006_s29 }
 0x321   :  { %3510 = vmatpush1.bf16.msra.mxu1 %v3509_v13  ;;  %2711 = vmatprep.mubr.f32.mxu1 %v4070_v14  ;;  %p4051_p2 = scmp.lt.s32.totalorder %s4049_s7, %s4045_s30 }
 0x322   :  { %3512 = vmatprep.subr.bf16.mxu1 %v3507_v25 }
 0x323   :  { %p4052_p3 = por %p4051_p2, %p4050_p1 }
 0x325   :  { %p4053_p4 = pnand %p4052_p3, %p4046_p0 }
 0x3d3   :  { %v3383_v18 = vpop.f32.mrb[4].mxu1 }
 0x3d4   :  { %v3384_v19 = vpop.f32.mrb[5].mxu1 }
 0x3d5   :  { %v3385_v22 = vadd.f32 %v3384_v19, %v3383_v18 }
 0x3d7   :  { %v2563_v23 = vmul.f32 0.03125, %v3385_v22 }
 0x3d9   :  { %3333 = vmatmul.mubr.msk.f32.vlgmr.msra.gmra.mrb[8].mxu1 %vm2643_vm5, %v2563_v23  ;;  %v2635_v28 = vmul.f32 %v2563_v23, %v2563_v23 }
 0x3da   :  { %3514 = vmatpush1.bf16.msra.mxu1 %v3509_v13  ;;  %2785 = vmatprep.mubr.f32.mxu1 %v4070_v14 }
 0x3db   :  { %3421 = vmatprep.subr.bf16.mxu1 %v4027_v32 }
 0x3f3   :  { %v3418_v26 = vpop.f32.mrb[6].mxu1 }
 0x3f4   :  { %v3419_v27 = vpop.f32.mrb[7].mxu1 }
 0x3f5   :  { %v3420_v15 = vadd.f32 %v3419_v27, %v3418_v26 }
 0x3f7   :  { %v2634_v29 = vmul.f32 0.03125, %v3420_v15 }
 0x3f9   :  { %v2636_v30 = vsub.f32 %v2634_v29, %v2635_v28 }
 0x3fb   :  { %v2637_v31 = vadd.f32 1e-05, %v2636_v30 }
 0x3fd   :  { %4043 = vrsqrt.f32 %v2637_v31 }
 0x407   :  { %v4044_v21 = vpop.eup %4043 }
 0x408   :  { %3334 = vmatmul.mubr.msk.f32.vlgmr.msra.gmra.mrb[10].mxu1 %vm2643_vm5, %v4044_v21 }
 0x409   :  { %3422 = vmatpush3.bf16.msra.mxu1 %v4028_v33 }
 0x40a   :  { %3423 = vmatprep.subr.bf16.mxu1 %v4029_v34 }
 0x40d   :  { %3424 = vmatpush3.bf16.msra.mxu1 %v4030_v20 }
 0x40e   :  { %3425 = vmatprep.subr.bf16.mxu1 %v4031_v35 }
 0x411   :  { %3426 = vmatpush3.bf16.msra.mxu1 %v4032_v36 }
 0x412   :  { %3427 = vmatprep.subr.bf16.mxu1 %v4033_v37 }
 0x415   :  { %3428 = vmatpush3.bf16.msra.mxu1 %v4034_v38 }
 0x416   :  { %3429 = vmatprep.subr.bf16.mxu1 %v4035_v39 }
 0x419   :  { %3430 = vmatpush3.bf16.msra.mxu1 %v4036_v40 }
 0x41a   :  { %3431 = vmatprep.subr.bf16.mxu1 %v4037_v42 }
 0x41d   :  { %3432 = vmatpush3.bf16.msra.mxu1 %v4038_v45 }
 0x41e   :  { %3433 = vmatprep.subr.bf16.mxu1 %v4039_v46 }
 0x421   :  { %3434 = vmatpush3.bf16.msra.mxu1 %v4040_v47 }
 0x422   :  { %3435 = vmatprep.subr.bf16.mxu1 %v4041_v48 }
 0x425   :  { %3436 = vmatpush3.bf16.msra.mxu1 %v4042_v49 }
 0x4ac   :  { %v2713_v51 = vpop.f32.mrb[8].mxu1 }
 0x4ad   :  { %v2795_v63 = vrot.slane %v2713_v51, %v2794_v50  ;;  %v2715_v52 = vpop.f32.mrb[9].mxu1 }
 0x4ae   :  { %v2799_v53 = vrot.slane %v2715_v52, %v2794_v50 }
 0x4af   :  { %v2800_v54 = vsub.f32 %v5237_v41, %v2795_v63 }
 0x4b0   :  { %v2801_v55 = vsub.f32 %v5241_v44, %v2799_v53 }
 0x4db   :  { %v2787_v56 = vpop.f32.mrb[10].mxu1 }
 0x4dc   :  { %v2805_v57 = vrot.slane %v2787_v56, %v2794_v50  ;;  %v2789_v58 = vpop.f32.mrb[11].mxu1 }
 0x4dd   :  { %v2809_v59 = vrot.slane %v2789_v58, %v2794_v50 }
 0x4de   :  { %v2810_v60 = vmul.f32 %v2805_v57, %v2800_v54 }
 0x4df   :  { %v2811_v61 = vmul.f32 %v2809_v59, %v2801_v55 }
 0x4e0   :  { %vm2812_vm6 = vcmp.ge.f32.partialorder %v2810_v60, 0.0  ;;  %v2814_v62 = vmul.f32 0.2, %v2810_v60 }
 0x4e1   :  { %v2815_v0 = vmul.f32 0.2, %v2811_v61  ;;  %vm2813_vm7 = vcmp.ge.f32.partialorder %v2811_v61, 0.0 }
 0x4e2   :  { %v2816_v1 = vsel %vm2812_vm6, %v2810_v60, %v2814_v62 }
 0x4e3   :  { %v2817_v43 = vsel %vm2813_vm7, %v2811_v61, %v2815_v0  ;;  %v2818_v5 = vpack.c.bf16 %v2816_v1, %v2816_v1 }
 0x4e4   :  { %v2819_v2 = vpack.c.bf16 %v2817_v43, %v2817_v43 }
 0x4e6   :  { %2980 = vmatprep.mubr.bf16.mxu1 %v2819_v2 }
 0x4e7   :  { %2981 = vmatmul.mubr.bf16.vlgmr.msra.gmra.mrb[12].mxu1 %v2818_v5 }
 0x5ba   :  { %v3437_v6 = vpop.f32.mrb[12].mxu1 }
 0x5bb   :  { %v3438_v41 = vpop.f32.mrb[13].mxu1 }
 0x5bc   :  { %v3439_v44 = vadd.f32 %v3438_v41, %v3437_v6  ;;  %v3440_v7 = vpop.f32.mrb[14].mxu1 }
 0x5bd   :  { %v3441_v8 = vpop.f32.mrb[15].mxu1 }
 0x5be   :  { %v2989_v3 = vsel %vm2988_vm8, %v3439_v44, 0.0 }
 0x5bf   :  { %v2990_v4 = vrot.slane %v2989_v3, 4 }
 0x5c1   :  { %v2991_v9 = vadd.f32 %v2990_v4, %v2989_v3 }
 0x5c3   :  { %v2992_v10 = vrot.slane %v2991_v9, 2 }
 0x5c5   :  { %v2993_v16 = vadd.f32 %v2992_v10, %v2991_v9 }
 0x5c7   :  { %v2994_v17 = vrot.slane %v2993_v16, 1 }
 0x5c9   :  { %v2995_v24 = vadd.f32 %v2994_v17, %v2993_v16 }
 0x5cb   :  { %v2996_v25 = vmul.f32 0.5, %v2995_v24 }
 0x5cd   :  { %2998 = vst.msk [vmem:[#allocation2] sm:$0x1] %vm2997_vm9, %v2996_v25 }
 0x5ce   :  { %4056 = shalt.err (!%p4053_p4)
}
 0x5cf   :  { %s4057_s10 = scalar_lea.hbm %s5343_s6, 16 }
 0x5d0   :  { %p4058_p5 = scmp.ne.s32.totalorder %s5343_s6, %s4057_s10  ;;  %p4061_p6 = scmp.lt.u32.totalorder %s4057_s10, %s5343_s6 }
 0x5d2   :  { %p4063_p7 = pnand %p4061_p6, %p4058_p5 }
 0x5d4   :  { %4066 = shalt.err (!%p4063_p7)
}
 0x5d5   :  { %3008 = dma.vmem_to_hbm [thread:$0]  %s3006_s29, 16, %s5343_s6, [#allocation3]  }
 0x5d6   :  { %4067 = dma.done.wait [#allocation3], 16  }
 0x5d7   :  { %4068 = vsyncadd [#allocation3], 4294967280 }
 0x5d8   :  { %3012 = vsyncpa [#allocation3], 1 }

</bundles_post_ra>
